<compile_context>
chip_gen: v6e
topology: v6e:2x2x1
jax: 0.10.0
libtpu: 0.0.40
codegen_flags: <defaults>
</compile_context>

<pallas_src>
import functools
import numpy as np
import jax
import jax.numpy as jnp
from jax.experimental import pallas as pl
from jax.experimental.pallas import tpu as pltpu


# ----------------------------- sparsity layout (host, block granularity only) -------------
def _make_layout(num_heads, num_blocks, mode, block_stride, attention, numverts, vertsize):
    """Port of DeepSpeedSparseSelfAttention._make_layout ('dense' / 'fixed')."""
    layout = np.zeros((num_heads, num_blocks, num_blocks), dtype=np.int64)
    if mode == "dense":
        layout[...] = 1
        return layout
    for h in range(num_heads):
        # _set_s1_layout: causal (or full) blocks inside each stride window
        for i in range(0, num_blocks, block_stride):
            for j in range(i, min(i + block_stride, num_blocks)):
                end = (j + 1) if attention == "unidirectional" else (i + block_stride)
                for k in range(i, min(end, num_blocks)):
                    layout[h, j, k] = 1
        # _set_s2_layout: vertical stripes
        start = block_stride - (1 + h % numverts) * vertsize
        for i in range(num_blocks):
            end = i if attention == "unidirectional" else num_blocks
            for j in range(start, end, block_stride):
                for k in range(j, min(j + vertsize, num_blocks)):
                    layout[h, i, k] = 1
    return layout


def _compress_layout_csr(layout, tqb, tkb, block_stride, numverts, vertsize):
    """CSR-style step list: one entry per (head, q_tile, nonzero kv_tile).

    meta rows: 0=head, 1=q_tile, 2=kv_tile, 3=is_first, 4=is_last, 5=stripe_start.
    """
    H, nb, _ = layout.shape
    nQ, nK = nb // tqb, nb // tkb
    tiles = layout.reshape(H, nQ, tqb, nK, tkb).max(axis=(2, 4)) > 0      # (H, nQ, nK)
    rows = []
    for h in range(H):
        stripe_start = block_stride - (1 + h % numverts) * vertsize
        for qi in range(nQ):
            nz = np.flatnonzero(tiles[h, qi])
            # fixed/dense layouts always keep the diagonal block, so this never trips.
            assert nz.size > 0, "q tile with zero visible kv tiles is not supported"
            for t, kt in enumerate(nz):
                rows.append((h, qi, int(kt),
                             int(t == 0), int(t == nz.size - 1), stripe_start))
    return np.asarray(rows, dtype=np.int32).T.copy()                      # (6, n_steps)


def _pick_tile(S, block, requested, target):
    if requested is not None:
        t = int(requested)
        assert t % block == 0 and S % t == 0, "tile must be a multiple of block and divide S"
        return t
    t = min(S, max(target, block))
    t -= t % block
    while S % t != 0:
        t -= block
    return t


def _default_vmem_limit_bytes():
    """Per-chip VMEM budget: ~48 MiB on v7x (64 MiB/TC), ~96 MiB on v5e/v6e."""
    cap = 64 << 20
    try:
        info_fn = getattr(pltpu, "get_tpu_info", None)
        if info_fn is not None:
            info = info_fn()
            for name in ("vmem_capacity_bytes", "vmem_bytes", "vmem_capacity"):
                val = getattr(info, name, None)
                if val:
                    cap = int(val)
                    break
    except Exception:
        pass
    return int(min(cap * 3 // 4, 100 << 20))


# ----------------------------- Pallas kernel ----------------------------------------------
def _sparse_flash_attn_kernel(meta_ref,                         # scalar prefetch (SMEM)
                              q_ref, k_ref, v_ref, o_ref,       # tiles (VMEM)
                              m_scr, l_scr, acc_scr, q_scr, *,  # scratch (VMEM)
                              scale, block, block_stride, q_tile, kv_tile,
                              mode, attention, vertsize, kv_resident):
    step = pl.program_id(1)
    qi = meta_ref[1, step]
    kv_t = meta_ref[2, step]
    is_first = meta_ref[3, step] == 1
    is_last = meta_ref[4, step] == 1

    @pl.when(is_first)
    def _init():
        # finite (not -inf) init keeps exp() arguments finite even if a whole
        # tile-row happens to be masked out on its first visited tile.
        m_scr[...] = jnp.full(m_scr.shape, -1e30, jnp.float32)
        l_scr[...] = jnp.zeros(l_scr.shape, jnp.float32)
        acc_scr[...] = jnp.zeros(acc_scr.shape, jnp.float32)
        # fold the softmax scale into Q once per q tile (not once per kv step).
        q_scr[...] = (q_ref[0, 0].astype(jnp.float32) * scale).astype(q_scr.dtype)

    if kv_resident:
        # K/V for the whole (b, head) are resident in VMEM; slice the current kv tile.
        kv_start = pl.multiple_of(kv_t * kv_tile, kv_tile)
        k = k_ref[0, 0, pl.ds(kv_start, kv_tile), :]
        v = v_ref[0, 0, pl.ds(kv_start, kv_tile), :]
    else:
        k = k_ref[0, 0]
        v = v_ref[0, 0]
    q = q_scr[...]

    # QK^T: contract last dims of both operands -> native 'nt' MXU form, f32 acc.
    s = jax.lax.dot_general(q, k, (((1,), (1,)), ((), ())),
                            preferred_element_type=jnp.float32)

    if mode == "fixed":
        # analytic block-sparse mask (s1 local-causal window + s2 vertical stripes),
        # built from iotas + shifts only: no (S,S) mask array, no vector int division.
        stripe_start = meta_ref[5, step]
        log_blk = block.bit_length() - 1
        log_bs = block_stride.bit_length() - 1
        iq = jax.lax.broadcasted_iota(jnp.int32, (q_tile, 1), 0)
        ik = jax.lax.broadcasted_iota(jnp.int32, (1, kv_tile), 1)
        r = jnp.right_shift(iq + qi * q_tile, log_blk)        # block row   (tq, 1)
        c = jnp.right_shift(ik + kv_t * kv_tile, log_blk)     # block col   (1, tk)
        rw = jnp.right_shift(r, log_bs)                       # stride window of row
        cw = jnp.right_shift(c, log_bs)                       # stride window of col
        cm = jnp.bitwise_and(c + (block_stride - stripe_start), block_stride - 1)
        jcol = c - cm                                         # stripe start block col
        if attention == "unidirectional":
            s1 = (c <= r) & (cw == rw)
            s2 = (c >= stripe_start) & (cm < vertsize) & (jcol < r)
        else:
            s1 = cw == rw
            s2 = (c >= stripe_start) & (cm < vertsize)
        s = jnp.where(s1 | s2, s, jnp.float32(-1e30))
        # No second select on p: masked logits hold -1e30, so exp underflows to 0
        # whenever the row has a real running max; a fully-masked row on its first
        # visited tile self-corrects because alpha underflows to exactly 0 later.

    # online softmax update (all state in f32)
    m_prev = m_scr[...]
    m_new = jnp.maximum(m_prev, jnp.max(s, axis=-1, keepdims=True))
    p = jnp.exp(s - m_new)
    alpha = jnp.exp(m_prev - m_new)
    l_scr[...] = alpha * l_scr[...] + jnp.sum(p, axis=-1, keepdims=True)
    acc_scr[...] = alpha * acc_scr[...] + jnp.dot(
        p.astype(v.dtype), v, preferred_element_type=jnp.float32)
    m_scr[...] = m_new

    @pl.when(is_last)
    def _finalize():
        # exact reciprocal: the approx EUP vrcp costs ~1e-3 relative error on the
        # normalization, which broke f32 parity with the reference op.
        inv_l = 1.0 / jnp.maximum(l_scr[...], jnp.float32(1e-30))
        o_ref[0, 0] = (acc_scr[...] * inv_l).astype(o_ref.dtype)


# ----------------------------- wrapper -----------------------------------------------------
def deepspeed_sparse_self_attention(query, key, value, *,
                                    block=16, stride=64, mode="fixed",
                                    attention="unidirectional", numverts=1, vertsize=1,
                                    q_tile=None, kv_tile=None, mxu_dtype=None,
                                    vmem_limit_bytes=None):
    """Forward pass of DeepSpeedSparseSelfAttention (rpe / key_padding_mask / attn_mask = None)."""
    B, H, S, D = query.shape
    assert key.shape == query.shape and value.shape == query.shape, \
        "only self-attention is supported"
    assert S % block == 0, "Sequence length must be divisible by block size"
    assert stride % block == 0, "Stride must be divisible by block size"
    block_stride = stride // block
    if mode == "fixed":
        assert block & (block - 1) == 0 and block_stride & (block_stride - 1) == 0, \
            "kernel requires power-of-two block and stride//block (as in torch_blocksparse)"
        assert block_stride % vertsize == 0 and numverts * vertsize <= block_stride

    out_dtype = query.dtype
    if mxu_dtype is not None:
        # feed the MXU (and the HBM pipeline) the narrow dtype; accumulation stays f32.
        query = query.astype(mxu_dtype)
        key = key.astype(mxu_dtype)
        value = value.astype(mxu_dtype)

    nb = S // block
    layout = _make_layout(H, nb, mode, block_stride, attention, numverts, vertsize)

    tq = _pick_tile(S, block, q_tile, target=256)
    tk = _pick_tile(S, block, kv_tile, target=512)
    assert (tq == S or tq % 8 == 0) and (tk == S or tk % 8 == 0)
    meta = _compress_layout_csr(layout, tq // block, tk // block,
                                block_stride, numverts, vertsize)
    n_steps = int(meta.shape[1])

    if vmem_limit_bytes is None:
        vmem_limit_bytes = _default_vmem_limit_bytes()

    # Keep K and V for a whole (b, head) resident in VMEM when the (double-buffered)
    # footprint fits comfortably; otherwise stream one kv tile per step.
    itemsize = jnp.dtype(query.dtype).itemsize
    kv_resident = (4 * S * D * itemsize) <= (vmem_limit_bytes // 2)

    scale = float(D) ** (-0.5)
    kernel = functools.partial(
        _sparse_flash_attn_kernel,
        scale=scale, block=block, block_stride=block_stride,
        q_tile=tq, kv_tile=tk, mode=mode, attention=attention,
        vertsize=vertsize, kv_resident=kv_resident)

    q_map = lambda b, s, md: (b, md[0, s], md[1, s], 0)
    if kv_resident:
        kv_spec = pl.BlockSpec((1, 1, S, D), lambda b, s, md: (b, md[0, s], 0, 0))
    else:
        kv_spec = pl.BlockSpec((1, 1, tk, D), lambda b, s, md: (b, md[0, s], md[2, s], 0))

    grid_spec = pltpu.PrefetchScalarGridSpec(
        num_scalar_prefetch=1,
        grid=(B, n_steps),                    # B parallel (megacore), steps carry state
        in_specs=[
            pl.BlockSpec((1, 1, tq, D), q_map),
            kv_spec,                          # K
            kv_spec,                          # V
        ],
        out_specs=pl.BlockSpec((1, 1, tq, D), q_map),
        scratch_shapes=[
            pltpu.VMEM((tq, 1), jnp.float32),   # running max m
            pltpu.VMEM((tq, 1), jnp.float32),   # running denom l
            pltpu.VMEM((tq, D), jnp.float32),   # f32 output accumulator
            pltpu.VMEM((tq, D), query.dtype),   # scale*Q held for the current q tile
        ],
    )

    out = pl.pallas_call(
        kernel,
        out_shape=jax.ShapeDtypeStruct((B, H, S, D), out_dtype),
        grid_spec=grid_spec,
        compiler_params=pltpu.CompilerParams(
            dimension_semantics=("parallel", "arbitrary"),
            vmem_limit_bytes=int(vmem_limit_bytes)),
    )(jnp.asarray(meta), query, key, value)
    return out


# ----------------------------- plain-JAX reference (test only) ----------------------------
def reference(query, key, value, *, block=16, stride=64, mode="fixed",
              attention="unidirectional", numverts=1, vertsize=1):
    B, H, S, D = query.shape
    layout = _make_layout(H, S // block, mode, stride // block, attention, numverts, vertsize)
    mask = np.kron(np.asarray(layout), np.ones((block, block), dtype=np.float32))
    scale = float(D) ** (-0.5)
    s = jnp.einsum("bhid,bhjd->bhij",
                   query.astype(jnp.float32), key.astype(jnp.float32)) * scale
    s = jnp.where(jnp.asarray(mask)[None] > 0, s, -1e30)
    p = jax.nn.softmax(s, axis=-1)
    return jnp.einsum("bhij,bhjd->bhid", p, value.astype(jnp.float32)).astype(query.dtype)


if __name__ == "__main__":
    # SparsityConfig(): block=16, stride=64, unidirectional, numverts=1, vertsize=1
    B, H, S, D = 2, 4, 256, 64
    key0 = jax.random.PRNGKey(0)
    kq, kk, kv = jax.random.split(key0, 3)
    q = jax.random.normal(kq, (B, H, S, D), dtype=jnp.float32)
    k = jax.random.normal(kk, (B, H, S, D), dtype=jnp.float32)
    v = jax.random.normal(kv, (B, H, S, D), dtype=jnp.float32)

    # small tiles so this run exercises the CSR grid: multi-kv-step accumulation,
    # all-zero tile skipping, partially masked tiles, resident-K/V slicing.
    # Production defaults are tq=256 / tk=512 (and mxu_dtype=jnp.bfloat16 for bf16 MXU).
    out = deepspeed_sparse_self_attention(q, k, v, q_tile=128, kv_tile=64)
    out = jax.block_until_ready(out)

    ref = reference(q, k, v)
    np.testing.assert_allclose(np.asarray(out), np.asarray(ref), rtol=2e-3, atol=2e-3)

    print("KERNEL_OK")
</pallas_src>

<mosaic_0001>
module attributes {stable_mosaic.version = 11 : i64} {
  func.func @_sparse_flash_attn_kernel(%arg0: i32, %arg1: i32, %arg2: memref<6x24xi32, #tpu.memory_space<smem>>, %arg3: memref<1x1x128x64xf32, #tpu.memory_space<vmem>>, %arg4: memref<1x1x256x64xf32, #tpu.memory_space<vmem>>, %arg5: memref<1x1x256x64xf32, #tpu.memory_space<vmem>>, %arg6: memref<1x1x128x64xf32, #tpu.memory_space<vmem>>, %arg7: memref<128x1xf32, #tpu.memory_space<vmem>>, %arg8: memref<128x1xf32, #tpu.memory_space<vmem>>, %arg9: memref<128x64xf32, #tpu.memory_space<vmem>>, %arg10: memref<128x64xf32, #tpu.memory_space<vmem>>) attributes {dimension_semantics = [#tpu.dimension_semantics<parallel>, #tpu.dimension_semantics<arbitrary>], iteration_bounds = array<i64: 2, 24>, scalar_prefetch = 1 : i64, scratch_operands = 4 : i64, tpu.core_type = #tpu.core_type<tc>, window_params = [{transform_indices = @transform_0, window_bounds = array<i64: 1, 1, 128, 64>}, {transform_indices = @transform_1, window_bounds = array<i64: 1, 1, 256, 64>}, {transform_indices = @transform_2, window_bounds = array<i64: 1, 1, 256, 64>}, {transform_indices = @transform_3, window_bounds = array<i64: 1, 1, 128, 64>}]} {
    %c1 = arith.constant 1 : index
    %0 = arith.index_cast %arg1 : i32 to index
    %1 = memref.load %arg2[%c1, %0] : memref<6x24xi32, #tpu.memory_space<smem>>
    %c2 = arith.constant 2 : index
    %2 = arith.index_cast %arg1 : i32 to index
    %3 = memref.load %arg2[%c2, %2] : memref<6x24xi32, #tpu.memory_space<smem>>
    %c3 = arith.constant 3 : index
    %4 = arith.index_cast %arg1 : i32 to index
    %5 = memref.load %arg2[%c3, %4] : memref<6x24xi32, #tpu.memory_space<smem>>
    %c1_i32 = arith.constant 1 : i32
    %6 = arith.cmpi eq, %5, %c1_i32 : i32
    %c4 = arith.constant 4 : index
    %7 = arith.index_cast %arg1 : i32 to index
    %8 = memref.load %arg2[%c4, %7] : memref<6x24xi32, #tpu.memory_space<smem>>
    %c1_i32_0 = arith.constant 1 : i32
    %9 = arith.cmpi eq, %8, %c1_i32_0 : i32
    %10 = arith.extui %6 : i1 to i32
    %c0_i32 = arith.constant 0 : i32
    %11 = arith.cmpi ne, %10, %c0_i32 : i32
    scf.if %11 {
      %cst_30 = arith.constant -1.000000e+30 : f32
      %90 = vector.broadcast %cst_30 : f32 to vector<128x1xf32>
      %c0_31 = arith.constant 0 : index
      %c0_32 = arith.constant 0 : index
      %91 = vector.load %arg7[%c0_31, %c0_32] : memref<128x1xf32, #tpu.memory_space<vmem>>, vector<128x1xf32>
      tpu.vector_store %arg7[%c0_31, %c0_32], %90 {strides = array<i32>} : memref<128x1xf32, #tpu.memory_space<vmem>>, vector<128x1xf32>,
      %cst_33 = arith.constant 0.000000e+00 : f32
      %92 = vector.broadcast %cst_33 : f32 to vector<128x1xf32>
      %c0_34 = arith.constant 0 : index
      %c0_35 = arith.constant 0 : index
      %93 = vector.load %arg8[%c0_34, %c0_35] : memref<128x1xf32, #tpu.memory_space<vmem>>, vector<128x1xf32>
      tpu.vector_store %arg8[%c0_34, %c0_35], %92 {strides = array<i32>} : memref<128x1xf32, #tpu.memory_space<vmem>>, vector<128x1xf32>,
      %cst_36 = arith.constant 0.000000e+00 : f32
      %94 = vector.broadcast %cst_36 : f32 to vector<128x64xf32>
      %c0_37 = arith.constant 0 : index
      %c0_38 = arith.constant 0 : index
      %95 = vector.load %arg9[%c0_37, %c0_38] : memref<128x64xf32, #tpu.memory_space<vmem>>, vector<128x64xf32>
      tpu.vector_store %arg9[%c0_37, %c0_38], %94 {strides = array<i32>} : memref<128x64xf32, #tpu.memory_space<vmem>>, vector<128x64xf32>,
      %c0_39 = arith.constant 0 : index
      %c0_40 = arith.constant 0 : index
      %c0_41 = arith.constant 0 : index
      %c0_42 = arith.constant 0 : index
      %96 = vector.load %arg3[%c0_39, %c0_40, %c0_41, %c0_42] : memref<1x1x128x64xf32, #tpu.memory_space<vmem>>, vector<1x1x128x64xf32>
      %97 = vector.shape_cast %96 : vector<1x1x128x64xf32> to vector<128x64xf32>
      %cst_43 = arith.constant 1.250000e-01 : f32
      %98 = vector.broadcast %cst_43 : f32 to vector<128x64xf32>
      %99 = arith.mulf %97, %98 : vector<128x64xf32>
      %c0_44 = arith.constant 0 : index
      %c0_45 = arith.constant 0 : index
      %100 = vector.load %arg10[%c0_44, %c0_45] : memref<128x64xf32, #tpu.memory_space<vmem>>, vector<128x64xf32>
      tpu.vector_store %arg10[%c0_44, %c0_45], %99 {strides = array<i32>} : memref<128x64xf32, #tpu.memory_space<vmem>>, vector<128x64xf32>,
    } else {
    }
    %c64_i32 = arith.constant 64 : i32
    %12 = arith.muli %3, %c64_i32 : i32
    %13 = tpu.assume_multiple %12, 64 : i32
    %c0 = arith.constant 0 : index
    %c0_1 = arith.constant 0 : index
    %14 = arith.index_cast %13 : i32 to index
    %c0_2 = arith.constant 0 : index
    %15 = vector.load %arg4[%c0, %c0_1, %14, %c0_2] : memref<1x1x256x64xf32, #tpu.memory_space<vmem>>, vector<1x1x64x64xf32>
    %16 = vector.shape_cast %15 : vector<1x1x64x64xf32> to vector<64x64xf32>
    %c0_3 = arith.constant 0 : index
    %c0_4 = arith.constant 0 : index
    %17 = arith.index_cast %13 : i32 to index
    %c0_5 = arith.constant 0 : index
    %18 = vector.load %arg5[%c0_3, %c0_4, %17, %c0_5] : memref<1x1x256x64xf32, #tpu.memory_space<vmem>>, vector<1x1x64x64xf32>
    %19 = vector.shape_cast %18 : vector<1x1x64x64xf32> to vector<64x64xf32>
    %c0_6 = arith.constant 0 : index
    %c0_7 = arith.constant 0 : index
    %20 = vector.load %arg10[%c0_6, %c0_7] : memref<128x64xf32, #tpu.memory_space<vmem>>, vector<128x64xf32>
    %cst = arith.constant dense<0.000000e+00> : vector<128x64xf32>
    %21 = tpu.matmul %20, %16, %cst {dimension_numbers = #tpu.dot_dimension_numbers<[1], [1], [0], [0], [0, 0, 1, 0], [], []>} : vector<128x64xf32>, vector<64x64xf32>, vector<128x64xf32> -> vector<128x64xf32>
    %c5 = arith.constant 5 : index
    %22 = arith.index_cast %arg1 : i32 to index
    %23 = memref.load %arg2[%c5, %22] : memref<6x24xi32, #tpu.memory_space<smem>>
    %24 = tpu.iota {dimensions = array<i32: 0>} : vector<128x1xi32>
    %25 = tpu.iota {dimensions = array<i32: 1>} : vector<1x64xi32>
    %c128_i32 = arith.constant 128 : i32
    %26 = arith.muli %1, %c128_i32 : i32
    %27 = vector.broadcast %26 : i32 to vector<128x1xi32>
    %28 = arith.addi %24, %27 : vector<128x1xi32>
    %c4_i32 = arith.constant 4 : i32
    %29 = vector.broadcast %c4_i32 : i32 to vector<128x1xi32>
    %30 = arith.shrsi %28, %29 : vector<128x1xi32>
    %c64_i32_8 = arith.constant 64 : i32
    %31 = arith.muli %3, %c64_i32_8 : i32
    %32 = vector.broadcast %31 : i32 to vector<1x64xi32>
    %33 = arith.addi %25, %32 : vector<1x64xi32>
    %c4_i32_9 = arith.constant 4 : i32
    %34 = vector.broadcast %c4_i32_9 : i32 to vector<1x64xi32>
    %35 = arith.shrsi %33, %34 : vector<1x64xi32>
    %c2_i32 = arith.constant 2 : i32
    %36 = vector.broadcast %c2_i32 : i32 to vector<128x1xi32>
    %37 = arith.shrsi %30, %36 : vector<128x1xi32>
    %c2_i32_10 = arith.constant 2 : i32
    %38 = vector.broadcast %c2_i32_10 : i32 to vector<1x64xi32>
    %39 = arith.shrsi %35, %38 : vector<1x64xi32>
    %c4_i32_11 = arith.constant 4 : i32
    %40 = arith.subi %c4_i32_11, %23 : i32
    %41 = vector.broadcast %40 : i32 to vector<1x64xi32>
    %42 = arith.addi %35, %41 : vector<1x64xi32>
    %c3_i32 = arith.constant 3 : i32
    %43 = vector.broadcast %c3_i32 : i32 to vector<1x64xi32>
    %44 = arith.andi %42, %43 : vector<1x64xi32>
    %45 = arith.subi %35, %44 : vector<1x64xi32>
    %46 = vector.broadcast %35 : vector<1x64xi32> to vector<128x64xi32>
    %47 = vector.broadcast %30 : vector<128x1xi32> to vector<128x64xi32>
    %48 = arith.cmpi sle, %46, %47 : vector<128x64xi32>
    %49 = vector.broadcast %39 : vector<1x64xi32> to vector<128x64xi32>
    %50 = vector.broadcast %37 : vector<128x1xi32> to vector<128x64xi32>
    %51 = arith.cmpi eq, %49, %50 : vector<128x64xi32>
    %52 = arith.andi %48, %51 : vector<128x64xi1>
    %53 = vector.broadcast %23 : i32 to vector<1x64xi32>
    %54 = arith.cmpi sge, %35, %53 : vector<1x64xi32>
    %c1_i32_12 = arith.constant 1 : i32
    %55 = vector.broadcast %c1_i32_12 : i32 to vector<1x64xi32>
    %56 = arith.cmpi slt, %44, %55 : vector<1x64xi32>
    %57 = arith.andi %54, %56 : vector<1x64xi1>
    %58 = vector.broadcast %45 : vector<1x64xi32> to vector<128x64xi32>
    %59 = vector.broadcast %30 : vector<128x1xi32> to vector<128x64xi32>
    %60 = arith.cmpi slt, %58, %59 : vector<128x64xi32>
    %61 = vector.broadcast %57 : vector<1x64xi1> to vector<128x64xi1>
    %62 = arith.andi %61, %60 : vector<128x64xi1>
    %63 = arith.ori %52, %62 : vector<128x64xi1>
    %cst_13 = arith.constant -1.000000e+30 : f32
    %64 = vector.broadcast %cst_13 : f32 to vector<128x64xf32>
    %65 = arith.select %63, %21, %64 : vector<128x64xi1>, vector<128x64xf32>
    %c0_14 = arith.constant 0 : index
    %c0_15 = arith.constant 0 : index
    %66 = vector.load %arg7[%c0_14, %c0_15] : memref<128x1xf32, #tpu.memory_space<vmem>>, vector<128x1xf32>
    %cst_16 = arith.constant dense<0xFF800000> : vector<128xf32>
    %67 = vector.multi_reduction <maximumf>, %65, %cst_16 [1] : vector<128x64xf32> to vector<128xf32>
    %68 = vector.shape_cast %67 : vector<128xf32> to vector<128x1xf32>
    %69 = arith.maximumf %66, %68 : vector<128x1xf32>
    %70 = vector.broadcast %69 : vector<128x1xf32> to vector<128x64xf32>
    %71 = arith.subf %65, %70 : vector<128x64xf32>
    %72 = math.exp %71 : vector<128x64xf32>
    %73 = arith.subf %66, %69 : vector<128x1xf32>
    %74 = math.exp %73 : vector<128x1xf32>
    %c0_17 = arith.constant 0 : index
    %c0_18 = arith.constant 0 : index
    %75 = vector.load %arg8[%c0_17, %c0_18] : memref<128x1xf32, #tpu.memory_space<vmem>>, vector<128x1xf32>
    %76 = arith.mulf %74, %75 : vector<128x1xf32>
    %cst_19 = arith.constant dense<0.000000e+00> : vector<128xf32>
    %77 = vector.multi_reduction <add>, %72, %cst_19 [1] : vector<128x64xf32> to vector<128xf32>
    %78 = vector.shape_cast %77 : vector<128xf32> to vector<128x1xf32>
    %79 = arith.addf %76, %78 : vector<128x1xf32>
    %c0_20 = arith.constant 0 : index
    %c0_21 = arith.constant 0 : index
    %80 = vector.load %arg8[%c0_20, %c0_21] : memref<128x1xf32, #tpu.memory_space<vmem>>, vector<128x1xf32>
    tpu.vector_store %arg8[%c0_20, %c0_21], %79 {strides = array<i32>} : memref<128x1xf32, #tpu.memory_space<vmem>>, vector<128x1xf32>,
    %c0_22 = arith.constant 0 : index
    %c0_23 = arith.constant 0 : index
    %81 = vector.load %arg9[%c0_22, %c0_23] : memref<128x64xf32, #tpu.memory_space<vmem>>, vector<128x64xf32>
    %82 = vector.broadcast %74 : vector<128x1xf32> to vector<128x64xf32>
    %83 = arith.mulf %82, %81 : vector<128x64xf32>
    %cst_24 = arith.constant dense<0.000000e+00> : vector<128x64xf32>
    %84 = tpu.matmul %72, %19, %cst_24 {dimension_numbers = #tpu.dot_dimension_numbers<[1], [0], [0], [1], [0, 0, 1, 1], [], []>} : vector<128x64xf32>, vector<64x64xf32>, vector<128x64xf32> -> vector<128x64xf32>
    %85 = arith.addf %83, %84 : vector<128x64xf32>
    %c0_25 = arith.constant 0 : index
    %c0_26 = arith.constant 0 : index
    %86 = vector.load %arg9[%c0_25, %c0_26] : memref<128x64xf32, #tpu.memory_space<vmem>>, vector<128x64xf32>
    tpu.vector_store %arg9[%c0_25, %c0_26], %85 {strides = array<i32>} : memref<128x64xf32, #tpu.memory_space<vmem>>, vector<128x64xf32>,
    %c0_27 = arith.constant 0 : index
    %c0_28 = arith.constant 0 : index
    %87 = vector.load %arg7[%c0_27, %c0_28] : memref<128x1xf32, #tpu.memory_space<vmem>>, vector<128x1xf32>
    tpu.vector_store %arg7[%c0_27, %c0_28], %69 {strides = array<i32>} : memref<128x1xf32, #tpu.memory_space<vmem>>, vector<128x1xf32>,
    %88 = arith.extui %9 : i1 to i32
    %c0_i32_29 = arith.constant 0 : i32
    %89 = arith.cmpi ne, %88, %c0_i32_29 : i32
    scf.if %89 {
      %c0_30 = arith.constant 0 : index
      %c0_31 = arith.constant 0 : index
      %90 = vector.load %arg8[%c0_30, %c0_31] : memref<128x1xf32, #tpu.memory_space<vmem>>, vector<128x1xf32>
      %cst_32 = arith.constant 1.000000e-30 : f32
      %91 = vector.broadcast %cst_32 : f32 to vector<128x1xf32>
      %92 = arith.maximumf %90, %91 : vector<128x1xf32>
      %cst_33 = arith.constant 1.000000e+00 : f32
      %93 = vector.broadcast %cst_33 : f32 to vector<128x1xf32>
      %94 = arith.divf %93, %92 : vector<128x1xf32>
      %c0_34 = arith.constant 0 : index
      %c0_35 = arith.constant 0 : index
      %95 = vector.load %arg9[%c0_34, %c0_35] : memref<128x64xf32, #tpu.memory_space<vmem>>, vector<128x64xf32>
      %96 = vector.broadcast %94 : vector<128x1xf32> to vector<128x64xf32>
      %97 = arith.mulf %95, %96 : vector<128x64xf32>
      %c0_36 = arith.constant 0 : index
      %c0_37 = arith.constant 0 : index
      %c0_38 = arith.constant 0 : index
      %c0_39 = arith.constant 0 : index
      %98 = vector.load %arg6[%c0_36, %c0_37, %c0_38, %c0_39] : memref<1x1x128x64xf32, #tpu.memory_space<vmem>>, vector<1x1x128x64xf32>
      %99 = vector.shape_cast %98 : vector<1x1x128x64xf32> to vector<128x64xf32>
      %100 = vector.shape_cast %97 : vector<128x64xf32> to vector<1x1x128x64xf32>
      tpu.vector_store %arg6[%c0_36, %c0_37, %c0_38, %c0_39], %100 {strides = array<i32>} : memref<1x1x128x64xf32, #tpu.memory_space<vmem>>, vector<1x1x128x64xf32>,
    } else {
    }
    return
  }
  func.func @transform_0(%arg0: i32, %arg1: i32, %arg2: memref<6x24xi32, #tpu.memory_space<smem>>) -> (i32, i32, i32, i32) {
    %c0 = arith.constant 0 : index
    %0 = arith.index_cast %arg1 : i32 to index
    %1 = memref.load %arg2[%c0, %0] : memref<6x24xi32, #tpu.memory_space<smem>>
    %c1 = arith.constant 1 : index
    %2 = arith.index_cast %arg1 : i32 to index
    %3 = memref.load %arg2[%c1, %2] : memref<6x24xi32, #tpu.memory_space<smem>>
    %c0_i32 = arith.constant 0 : i32
    %c0_i32_0 = arith.constant 0 : i32
    return %arg0, %1, %3, %c0_i32 : i32, i32, i32, i32
  }
  func.func @transform_1(%arg0: i32, %arg1: i32, %arg2: memref<6x24xi32, #tpu.memory_space<smem>>) -> (i32, i32, i32, i32) {
    %c0 = arith.constant 0 : index
    %0 = arith.index_cast %arg1 : i32 to index
    %1 = memref.load %arg2[%c0, %0] : memref<6x24xi32, #tpu.memory_space<smem>>
    %c0_i32 = arith.constant 0 : i32
    %c0_i32_0 = arith.constant 0 : i32
    %c0_i32_1 = arith.constant 0 : i32
    return %arg0, %1, %c0_i32, %c0_i32_0 : i32, i32, i32, i32
  }
  func.func @transform_2(%arg0: i32, %arg1: i32, %arg2: memref<6x24xi32, #tpu.memory_space<smem>>) -> (i32, i32, i32, i32) {
    %c0 = arith.constant 0 : index
    %0 = arith.index_cast %arg1 : i32 to index
    %1 = memref.load %arg2[%c0, %0] : memref<6x24xi32, #tpu.memory_space<smem>>
    %c0_i32 = arith.constant 0 : i32
    %c0_i32_0 = arith.constant 0 : i32
    %c0_i32_1 = arith.constant 0 : i32
    return %arg0, %1, %c0_i32, %c0_i32_0 : i32, i32, i32, i32
  }
  func.func @transform_3(%arg0: i32, %arg1: i32, %arg2: memref<6x24xi32, #tpu.memory_space<smem>>) -> (i32, i32, i32, i32) {
    %c0 = arith.constant 0 : index
    %0 = arith.index_cast %arg1 : i32 to index
    %1 = memref.load %arg2[%c0, %0] : memref<6x24xi32, #tpu.memory_space<smem>>
    %c1 = arith.constant 1 : index
    %2 = arith.index_cast %arg1 : i32 to index
    %3 = memref.load %arg2[%c1, %2] : memref<6x24xi32, #tpu.memory_space<smem>>
    %c0_i32 = arith.constant 0 : i32
    %c0_i32_0 = arith.constant 0 : i32
    return %arg0, %1, %3, %c0_i32 : i32, i32, i32, i32
  }
}

</mosaic_0001>

<bundles_post_ra>
// kernel: tpu_custom_call.1
= control target key start
LH: loop header
LB: loop body
LE: loop exit
PB: predicated region body
PF: predicated region fallthrough
CT: control target
= control target key end

     0   :  { %s3644_s0 = inlined_call_operand.vmem [shape: s32[6,24], index: 0, kind: input, shape index: {}]   ;;  %s3645_s1 = inlined_call_operand.vmem [shape: f32[2,4,256,64], index: 1, kind: input, shape index: {}]   ;;  %s3646_s2 = inlined_call_operand.vmem [shape: f32[2,4,256,64], index: 2, kind: input, shape index: {}]   ;;  %s3647_s3 = inlined_call_operand.vmem [shape: f32[2,4,256,64], index: 3, kind: input, shape index: {}]   ;;  %s3648_s4 = inlined_call_operand.vmem [shape: f32[2,4,256,64], index: 4, kind: output, shape index: {}]  }
   0x1   :  { %3668 = sst [smem:[#allocation11_spill]] %s3645_s1  ;;  %s9_s17 = sshll.u32 %s3644_s0, 4  ;;  %s10_s17 = int_to_ptr.vmem [resolvable:$true] %s9_s17 }
   0x2   :  { %3669 = sst [smem:[#allocation12_spill]] %s3646_s2  ;;  %s2480_s18 = scalar_lea.vmem %s10_s17, 128 }
   0x3   :  { %p2481_p0 = scmp.ne.s32.totalorder %s10_s17, %s2480_s18  ;;  %p2485_p1 = scmp.lt.s32.totalorder %s10_s17, %s10_s17 }
   0x4   :  { %p2486_p2 = scmp.lt.s32.totalorder %s2480_s18, %s2480_s18 }
   0x6   :  { %p2487_p3 = por %p2486_p2, %p2485_p1 }
   0x8   :  { %p2488_p4 = pnand %p2487_p3, %p2481_p0 }
   0xa   :  { %2491 = shalt.err (!%p2488_p4)  }
   0xb   :  { %s2534_s19 = smov [#allocation7]  }
   0xc   :  { %12 = dma.vmem_to_smem %s10_s17, 128, %s2534_s19, [#allocation6] }
   0xd   :  { %2512 = dma.done.wait [#allocation6], 128 }
   0xe   :  { %2513 = vsyncadd [#allocation6], 4294967168 }
   0xf   :  { %14 = sfence }
  0x10   :  { %s2567_s20 = smov 0   ;;  %s2569_s21 = smov 0  }
  0x11   :  { %s2571_s22 = smov 0   ;;  %s2573_s0 = smov 0  }
  0x12   :  { %s2575_s23 = smov 0  }
  0x13 LB: > { %s29_s24 = sadd.s32 1, %s2524_s22  ;;  %s32_s25 = sadd.s32 1, %s2528_s0  ;;  %s2532_s23 = sphi %s2575_s23, %s20_s23   ;;  %s2528_s0 = sphi %s2573_s0, %s3866_s0   ;;  %s2524_s22 = sphi %s2571_s22, %s3865_s22   ;;  %s2520_s21 = sphi %s2569_s21, %s3864_s21   ;;  %s2516_s20 = sphi %s2567_s20, %s3863_s20  }
  0x14   : > { %p30_p5 = scmp.ge.s32.totalorder %s29_s24, 24  ;;  %p2117_p6 = scmp.ge.s32.totalorder %s2532_s23, 1 }
  0x15   : > { %p267_p7 = scmp.lt.s32.totalorder %s2532_s23, 49 }
  0x16   : > { %s3868_s24 = smov (%p30_p5, %s29_s24), 0  ;;  %s3870_s25 = smov (!%p30_p5, %s32_s25), %s2528_s0 }
  0x17   : > { %3670 = sst [smem:[#allocation9_spill]] %s3868_s24  ;;  %p268_p8 = pnand %p2117_p6, %p267_p7 }
  0x18   : > { %p34_p9 = scmp.ge.s32.totalorder %s3870_s25, 2  ;;  %s345_s26 = sld [smem:[#allocation7 + %s2516_s20]] (!%p268_p8) }
  0x19   : > { %271 = sbr.rel (%p268_p8) target bundleno = 1027 (0x403), region = 32  ;;  %s346_s27 = sshra.s32 (!%p268_p8), %s2516_s20, 7 }
  0x1a   : > { %s3872_s25 = smov (%p34_p9, %s3870_s25), 0  ;;  %s2601_s28 = sshll.u32 (!%p268_p8), %s346_s27, 7 }
  0x1b   : > { %3671 = sst [smem:[#allocation10_spill]] %s3872_s25  ;;  %s2604_s29 = sand.u32 (!%p268_p8), 127, %s2516_s20 }
  0x1c   : > { %s2194_s30 = sadd.s32 (!%p268_p8), 128, %s2601_s28  ;;  %p355_p10 = scmp.lt.s32.totalorder (!%p268_p8), %s2520_s21, 1 }
  0x1d   : > { %s352_s5 = sadd.s32 (!%p268_p8), %s2194_s30, %s2604_s29  ;;  %s377_s6 = sld [smem:[#allocation7 + %s2516_s20]] (!%p268_p8) }
  0x1e   : > { %s353_s7 = sld [smem:[#allocation7 + %s352_s5]]  ;;  %s3874_s21 = smov (!%p355_p10, %s2520_s21), 1 }
  0x1f   : > { %p357_p11 = scmp.lt.s32.totalorder %s345_s26, 3  ;;  %s388_s9 = sld [smem:[#allocation7 + %s2516_s20]] }
  0x20   : > { %s2611_s10 = sshll.u32 %s3874_s21, 7  ;;  %s2614_s11 = sld [smem:[#allocation7 + %s2516_s20]] }
  0x21   : > { %s3876_s26 = smov (!%p357_p11, %s345_s26), 3  ;;  %s2616_s12 = sld [smem:[#allocation7 + %s352_s5]] }
  0x22   : > { %s2120_s14 = sshll.u32 %s3876_s26, 5  ;;  %s2618_s15 = sld [smem:[#allocation7 + %s352_s5]] }
  0x23   : > { %p380_p12 = scmp.lt.s32.totalorder %s377_s6, 3  ;;  %s3672_s2 = sld [smem:[#allocation12_spill]] }
  0x24   : > { %s2119_s13 = sshll.u32 %s353_s7, 4  ;;  %s3673_s1 = sld [smem:[#allocation11_spill]] }
  0x25   : > { %p359_p13 = scmp.lt.s32.totalorder %s2119_s13, 31  ;;  %s3878_s6 = smov (!%p380_p12, %s377_s6), 3 }
  0x26   : > { %s2123_s16 = sshll.u32 %s3878_s6, 5  ;;  %p391_p0 = scmp.lt.s32.totalorder %s388_s9, 3 }
  0x27   : > { %s3880_s13 = smov (!%p359_p13, %s2119_s13), 31  ;;  %s384_s18 = sadd.s32 %s2123_s16, %s2611_s10 }
  0x28   : > { %s362_s17 = sadd.s32 %s2120_s14, %s3880_s13  ;;  %s2125_s20 = sshll.u32 %s384_s18, 3 }
  0x29   : > { %s364_s19 = sadd.s32 %s2611_s10, %s362_s17  ;;  %s2625_s30 = scalar_lea.vmem %s3672_s2, %s2125_s20 }
  0x2a   : > { %s2122_s21 = sshll.u32 %s364_s19, 3  ;;  %s2130_s6 = sshll.u32 %s2616_s12, 4 }
  0x2b   : > { %s2630_s8 = scalar_lea.vmem %s3673_s1, %s2122_s21  ;;  %s3882_s9 = smov (!%p391_p0, %s388_s9), 3 }
  0x2c   : > { %p411_p1 = scmp.lt.s32.totalorder %s2614_s11, 3  ;;  %p413_p2 = scmp.lt.s32.totalorder %s2130_s6, 31 }
  0x2d   : > { %s2126_s13 = sshll.u32 %s3882_s9, 5  ;;  %s3674_s14 = sadd.s32 256, %s2601_s28 }
  0x2e   : > { %s441_s16 = sadd.s32 %s3674_s14, %s2604_s29  ;;  %s395_s17 = sadd.s32 %s2126_s13, %s2611_s10 }
  0x2f   : > { %s2638_s18 = sld [smem:[#allocation7 + %s441_s16]]  ;;  %s2128_s19 = sshll.u32 %s395_s17, 3 }
  0x30   : > { %s2202_s20 = sadd.s32 384, %s2601_s28  ;;  %s2644_s21 = scalar_lea.vmem %s3647_s3, %s2128_s19 }
  0x31   : > { %s445_s12 = sadd.s32 %s2202_s20, %s2604_s29  ;;  %s3884_s11 = smov (!%p411_p1, %s2614_s11), 3 }
  0x32   : > { %s3886_s6 = smov (!%p413_p2, %s2130_s6), 31  ;;  %s2131_s5 = sshll.u32 %s3884_s11, 5 }
  0x33   : > { %s446_s7 = sld [smem:[#allocation7 + %s445_s12]]  ;;  %s416_s1 = sadd.s32 %s2131_s5, %s3886_s6 }
  0x34   : > { %s2204_s2 = sadd.s32 512, %s2601_s28  ;;  %s418_s9 = sadd.s32 %s2611_s10, %s416_s1 }
  0x35   : > { %s450_s25 = sadd.s32 %s2204_s2, %s2604_s29  ;;  %s2133_s14 = sshll.u32 %s418_s9, 3 }
  0x36   : > { %s2651_s13 = sld [smem:[#allocation7 + %s450_s25]]  ;;  %s2656_s24 = scalar_lea.vmem %s3648_s4, %s2133_s14 }
  0x39   : > { %p2138_p3 = scmp.ne.s32.totalorder %s446_s7, 1 }
  0x3b   : > { %455 = sbr.rel (%p2138_p3) target bundleno = 97 (0x61), region = 36 }
  0x40   : > { %vm456_vm0 = vcmask 7168   ;;  %vm489_vm1 = vcmask 523264   ;;  %v506_v0 = vld [vmem:[%s2630_s8] sm:$0xff]  ;;  %v2535_v1 = vmov -1e+30   ;;  %v2536_v2 = vmov 0.0  }
  0x41   : > { %457 = vst.msk [vmem:[#allocation2] sm:$0xff] %vm456_vm0, %v2535_v1  ;;  %458 = vst.msk [vmem:[#allocation2 + $0x8] sm:$0xff] %vm456_vm0, %v2535_v1  ;;  %v522_v3 = vmul.f32 0.125, %v506_v0  ;;  %v507_v4 = vld [vmem:[%s2630_s8 + $0x8] sm:$0xff]  ;;  %v508_v5 = vld [vmem:[%s2630_s8 + $0x10] sm:$0xff] }
  0x42   : > { %459 = vst.msk [vmem:[#allocation2 + $0x10] sm:$0xff] %vm456_vm0, %v2535_v1  ;;  %460 = vst.msk [vmem:[#allocation2 + $0x18] sm:$0xff] %vm456_vm0, %v2535_v1  ;;  %v509_v6 = vld [vmem:[%s2630_s8 + $0x18] sm:$0xff]  ;;  %v523_v7 = vmul.f32 0.125, %v507_v4  ;;  %v524_v8 = vmul.f32 0.125, %v508_v5  ;;  %v510_v10 = vld [vmem:[%s2630_s8 + $0x20] sm:$0xff] }
  0x43   : > { %461 = vst.msk [vmem:[#allocation2 + $0x20] sm:$0xff] %vm456_vm0, %v2535_v1  ;;  %462 = vst.msk [vmem:[#allocation2 + $0x28] sm:$0xff] %vm456_vm0, %v2535_v1  ;;  %v525_v9 = vmul.f32 0.125, %v509_v6  ;;  %v511_v11 = vld [vmem:[%s2630_s8 + $0x28] sm:$0xff]  ;;  %v512_v12 = vld [vmem:[%s2630_s8 + $0x30] sm:$0xff]  ;;  %v526_v13 = vmul.f32 0.125, %v510_v10 }
  0x44   : > { %463 = vst.msk [vmem:[#allocation2 + $0x30] sm:$0xff] %vm456_vm0, %v2535_v1  ;;  %464 = vst.msk [vmem:[#allocation2 + $0x38] sm:$0xff] %vm456_vm0, %v2535_v1  ;;  %v527_v14 = vmul.f32 0.125, %v511_v11  ;;  %v528_v15 = vmul.f32 0.125, %v512_v12  ;;  %v513_v16 = vld [vmem:[%s2630_s8 + $0x38] sm:$0xff]  ;;  %v514_v17 = vld [vmem:[%s2630_s8 + $0x40] sm:$0xff] }
  0x45   : > { %465 = vst.msk [vmem:[#allocation2 + $0x40] sm:$0xff] %vm456_vm0, %v2535_v1  ;;  %466 = vst.msk [vmem:[#allocation2 + $0x48] sm:$0xff] %vm456_vm0, %v2535_v1  ;;  %v515_v18 = vld [vmem:[%s2630_s8 + $0x48] sm:$0xff]  ;;  %v529_v19 = vmul.f32 0.125, %v513_v16  ;;  %v530_v20 = vmul.f32 0.125, %v514_v17  ;;  %v516_v22 = vld [vmem:[%s2630_s8 + $0x50] sm:$0xff] }
  0x46   : > { %467 = vst.msk [vmem:[#allocation2 + $0x50] sm:$0xff] %vm456_vm0, %v2535_v1  ;;  %468 = vst.msk [vmem:[#allocation2 + $0x58] sm:$0xff] %vm456_vm0, %v2535_v1  ;;  %v531_v21 = vmul.f32 0.125, %v515_v18  ;;  %v517_v23 = vld [vmem:[%s2630_s8 + $0x58] sm:$0xff]  ;;  %v518_v24 = vld [vmem:[%s2630_s8 + $0x60] sm:$0xff]  ;;  %v532_v25 = vmul.f32 0.125, %v516_v22 }
  0x47   : > { %469 = vst.msk [vmem:[#allocation2 + $0x60] sm:$0xff] %vm456_vm0, %v2535_v1  ;;  %470 = vst.msk [vmem:[#allocation2 + $0x68] sm:$0xff] %vm456_vm0, %v2535_v1  ;;  %v533_v26 = vmul.f32 0.125, %v517_v23  ;;  %v534_v27 = vmul.f32 0.125, %v518_v24  ;;  %v519_v28 = vld [vmem:[%s2630_s8 + $0x68] sm:$0xff]  ;;  %v520_v29 = vld [vmem:[%s2630_s8 + $0x70] sm:$0xff] }
  0x48   : > { %471 = vst.msk [vmem:[#allocation2 + $0x70] sm:$0xff] %vm456_vm0, %v2535_v1  ;;  %472 = vst.msk [vmem:[#allocation2 + $0x78] sm:$0xff] %vm456_vm0, %v2535_v1  ;;  %v521_v30 = vld [vmem:[%s2630_s8 + $0x78] sm:$0xff]  ;;  %v535_v31 = vmul.f32 0.125, %v519_v28  ;;  %v536_v32 = vmul.f32 0.125, %v520_v29 }
  0x49   : > { %473 = vst.msk [vmem:[#allocation3] sm:$0xff] %vm456_vm0, %v2536_v2  ;;  %474 = vst.msk [vmem:[#allocation3 + $0x8] sm:$0xff] %vm456_vm0, %v2536_v2  ;;  %v537_v33 = vmul.f32 0.125, %v521_v30 }
  0x4a   : > { %475 = vst.msk [vmem:[#allocation3 + $0x10] sm:$0xff] %vm456_vm0, %v2536_v2  ;;  %476 = vst.msk [vmem:[#allocation3 + $0x18] sm:$0xff] %vm456_vm0, %v2536_v2 }
  0x4b   : > { %477 = vst.msk [vmem:[#allocation3 + $0x20] sm:$0xff] %vm456_vm0, %v2536_v2  ;;  %478 = vst.msk [vmem:[#allocation3 + $0x28] sm:$0xff] %vm456_vm0, %v2536_v2 }
  0x4c   : > { %479 = vst.msk [vmem:[#allocation3 + $0x30] sm:$0xff] %vm456_vm0, %v2536_v2  ;;  %480 = vst.msk [vmem:[#allocation3 + $0x38] sm:$0xff] %vm456_vm0, %v2536_v2 }
  0x4d   : > { %481 = vst.msk [vmem:[#allocation3 + $0x40] sm:$0xff] %vm456_vm0, %v2536_v2  ;;  %482 = vst.msk [vmem:[#allocation3 + $0x48] sm:$0xff] %vm456_vm0, %v2536_v2 }
  0x4e   : > { %483 = vst.msk [vmem:[#allocation3 + $0x50] sm:$0xff] %vm456_vm0, %v2536_v2  ;;  %484 = vst.msk [vmem:[#allocation3 + $0x58] sm:$0xff] %vm456_vm0, %v2536_v2 }
  0x4f   : > { %485 = vst.msk [vmem:[#allocation3 + $0x60] sm:$0xff] %vm456_vm0, %v2536_v2  ;;  %486 = vst.msk [vmem:[#allocation3 + $0x68] sm:$0xff] %vm456_vm0, %v2536_v2 }
  0x50   : > { %487 = vst.msk [vmem:[#allocation3 + $0x70] sm:$0xff] %vm456_vm0, %v2536_v2  ;;  %488 = vst.msk [vmem:[#allocation3 + $0x78] sm:$0xff] %vm456_vm0, %v2536_v2 }
  0x51   : > { %490 = vst.msk [vmem:[#allocation4] sm:$0xff] %vm489_vm1, %v2536_v2  ;;  %491 = vst.msk [vmem:[#allocation4 + $0x8] sm:$0xff] %vm489_vm1, %v2536_v2 }
  0x52   : > { %492 = vst.msk [vmem:[#allocation4 + $0x10] sm:$0xff] %vm489_vm1, %v2536_v2  ;;  %493 = vst.msk [vmem:[#allocation4 + $0x18] sm:$0xff] %vm489_vm1, %v2536_v2 }
  0x53   : > { %494 = vst.msk [vmem:[#allocation4 + $0x20] sm:$0xff] %vm489_vm1, %v2536_v2  ;;  %495 = vst.msk [vmem:[#allocation4 + $0x28] sm:$0xff] %vm489_vm1, %v2536_v2 }
  0x54   : > { %496 = vst.msk [vmem:[#allocation4 + $0x30] sm:$0xff] %vm489_vm1, %v2536_v2  ;;  %497 = vst.msk [vmem:[#allocation4 + $0x38] sm:$0xff] %vm489_vm1, %v2536_v2 }
  0x55   : > { %498 = vst.msk [vmem:[#allocation4 + $0x40] sm:$0xff] %vm489_vm1, %v2536_v2  ;;  %499 = vst.msk [vmem:[#allocation4 + $0x48] sm:$0xff] %vm489_vm1, %v2536_v2 }
  0x56   : > { %500 = vst.msk [vmem:[#allocation4 + $0x50] sm:$0xff] %vm489_vm1, %v2536_v2  ;;  %501 = vst.msk [vmem:[#allocation4 + $0x58] sm:$0xff] %vm489_vm1, %v2536_v2 }
  0x57   : > { %502 = vst.msk [vmem:[#allocation4 + $0x60] sm:$0xff] %vm489_vm1, %v2536_v2  ;;  %503 = vst.msk [vmem:[#allocation4 + $0x68] sm:$0xff] %vm489_vm1, %v2536_v2 }
  0x58   : > { %504 = vst.msk [vmem:[#allocation4 + $0x70] sm:$0xff] %vm489_vm1, %v2536_v2  ;;  %505 = vst.msk [vmem:[#allocation4 + $0x78] sm:$0xff] %vm489_vm1, %v2536_v2 }
  0x59   : > { %538 = vst.msk [vmem:[#allocation5] sm:$0xff] %vm489_vm1, %v522_v3  ;;  %539 = vst.msk [vmem:[#allocation5 + $0x8] sm:$0xff] %vm489_vm1, %v523_v7 }
  0x5a   : > { %540 = vst.msk [vmem:[#allocation5 + $0x10] sm:$0xff] %vm489_vm1, %v524_v8  ;;  %541 = vst.msk [vmem:[#allocation5 + $0x18] sm:$0xff] %vm489_vm1, %v525_v9 }
  0x5b   : > { %542 = vst.msk [vmem:[#allocation5 + $0x20] sm:$0xff] %vm489_vm1, %v526_v13  ;;  %543 = vst.msk [vmem:[#allocation5 + $0x28] sm:$0xff] %vm489_vm1, %v527_v14 }
  0x5c   : > { %544 = vst.msk [vmem:[#allocation5 + $0x30] sm:$0xff] %vm489_vm1, %v528_v15  ;;  %545 = vst.msk [vmem:[#allocation5 + $0x38] sm:$0xff] %vm489_vm1, %v529_v19 }
  0x5d   : > { %546 = vst.msk [vmem:[#allocation5 + $0x40] sm:$0xff] %vm489_vm1, %v530_v20  ;;  %547 = vst.msk [vmem:[#allocation5 + $0x48] sm:$0xff] %vm489_vm1, %v531_v21 }
  0x5e   : > { %548 = vst.msk [vmem:[#allocation5 + $0x50] sm:$0xff] %vm489_vm1, %v532_v25  ;;  %549 = vst.msk [vmem:[#allocation5 + $0x58] sm:$0xff] %vm489_vm1, %v533_v26 }
  0x5f   : > { %550 = vst.msk [vmem:[#allocation5 + $0x60] sm:$0xff] %vm489_vm1, %v534_v27  ;;  %551 = vst.msk [vmem:[#allocation5 + $0x68] sm:$0xff] %vm489_vm1, %v535_v31 }
  0x60   : > { %552 = vst.msk [vmem:[#allocation5 + $0x70] sm:$0xff] %vm489_vm1, %v536_v32  ;;  %553 = vst.msk [vmem:[#allocation5 + $0x78] sm:$0xff] %vm489_vm1, %v537_v33 }
  0x61 PF: > { %s2739_s1 = sshll.u32 %s2638_s18, 6  ;;  %vm3649_vm2 = vcmask 523264   ;;  %v573_v34 = vld [vmem:[#allocation5] sm:$0xff]  ;;  %v574_v43 = vld [vmem:[#allocation5 + $0x8] sm:$0xff]  ;;  %v575_v44 = vld [vmem:[#allocation5 + $0x10] sm:$0xff]  ;;  %s2206_s25 = sadd.s32 640, %s2601_s28  ;;  %v811_v58 = vlaneseq }
  0x62   : > { %s555_s2 = scalar_lea.vmem %s2625_s30, %s2739_s1  ;;  %2271 = vmatprep.mubr.msk.f32.mxu0 %vm3649_vm2, %v573_v34  ;;  %v576_v45 = vld [vmem:[#allocation5 + $0x18] sm:$0xff]  ;;  %v577_v46 = vld [vmem:[#allocation5 + $0x20] sm:$0xff]  ;;  %v578_v47 = vld [vmem:[#allocation5 + $0x28] sm:$0xff]  ;;  %s809_s8 = sadd.s32 %s2206_s25, %s2604_s29  ;;  %v864_v60 = vstv %s2739_s1  ;;  %v3729_v32 = vmov 0 }
  0x63   : > { %v563_v35 = vld [vmem:[%s555_s2 + $0x38] sm:$0xff]  ;;  %v562_v36 = vld [vmem:[%s555_s2 + $0x30] sm:$0xff]  ;;  %v561_v37 = vld [vmem:[%s555_s2 + $0x28] sm:$0xff]  ;;  %s810_s10 = sld [smem:[#allocation7 + %s809_s8]]  ;;  %v829_v59 = vand.u32 127, %v811_v58  ;;  %v2778_v61 = vshrl.u32 %v811_v58, 7  ;;  %s3282_s28 = scalar_lea.vmem %s2644_s21, %s2739_s1 }
  0x64   : > { %2255 = vmatprep.subr.msk.mxu0 %vm3649_vm2, %v563_v35  ;;  %v560_v38 = vld [vmem:[%s555_s2 + $0x20] sm:$0xff]  ;;  %v559_v39 = vld [vmem:[%s555_s2 + $0x18] sm:$0xff]  ;;  %v558_v40 = vld [vmem:[%s555_s2 + $0x10] sm:$0xff]  ;;  %s2165_s11 = sshll.u32 %s2618_s15, 7  ;;  %p2182_p4 = scmp.ne.s32.totalorder %s2651_s13, 1 }
  0x65   : > { %2256 = vmatpush3.xpose.msk.msra.mxu0 %vm3649_vm2, %v563_v35  ;;  %v557_v41 = vld [vmem:[%s555_s2 + $0x8] sm:$0xff]  ;;  %v556_v42 = vld [vmem:[%s555_s2] sm:$0xff]  ;;  %v579_v48 = vld [vmem:[#allocation5 + $0x30] sm:$0xff]  ;;  %v865_v62 = vadd.s32 %v864_v60, %v829_v59  ;;  %v813_v63 = vadd.s32 8, %v2778_v61  ;;  %v2782_v0 = vstv %s2165_s11  ;;  %v815_v4 = vadd.s32 24, %v2778_v61 }
  0x66   : > { %2257 = vmatprep.subr.msk.mxu0 %vm3649_vm2, %v562_v36  ;;  %v580_v49 = vld [vmem:[#allocation5 + $0x38] sm:$0xff]  ;;  %v581_v50 = vld [vmem:[#allocation5 + $0x40] sm:$0xff]  ;;  %v582_v51 = vld [vmem:[#allocation5 + $0x48] sm:$0xff]  ;;  %v832_v6 = vadd.s32 %v2782_v0, %v2778_v61  ;;  %v814_v7 = vadd.s32 16, %v2778_v61  ;;  %v817_v10 = vadd.s32 40, %v2778_v61  ;;  %v816_v17 = vadd.s32 32, %v2778_v61 }
  0x67   : > { %v583_v52 = vld [vmem:[#allocation5 + $0x50] sm:$0xff]  ;;  %v584_v53 = vld [vmem:[#allocation5 + $0x58] sm:$0xff]  ;;  %v585_v54 = vld [vmem:[#allocation5 + $0x60] sm:$0xff]  ;;  %v2784_v1 = vshra.s32 %v865_v62, 4  ;;  %v833_v3 = vadd.s32 %v2782_v0, %v813_v63  ;;  %v835_v9 = vadd.s32 %v2782_v0, %v815_v4  ;;  %v819_v20 = vadd.s32 56, %v2778_v61 }
  0x68   : > { %v586_v55 = vld [vmem:[#allocation5 + $0x68] sm:$0xff]  ;;  %v587_v56 = vld [vmem:[#allocation5 + $0x70] sm:$0xff]  ;;  %v588_v57 = vld [vmem:[#allocation5 + $0x78] sm:$0xff]  ;;  %v848_v12 = vshra.s32 %v832_v6, 4  ;;  %v834_v13 = vadd.s32 %v2782_v0, %v814_v7  ;;  %v837_v19 = vadd.s32 %v2782_v0, %v817_v10  ;;  %v836_v24 = vadd.s32 %v2782_v0, %v816_v17 }
  0x69   : > { %2258 = vmatpush3.xpose.msk.msra.mxu0 %vm3649_vm2, %v562_v36  ;;  %s884_s30 = ssub.s32 4, %s810_s10  ;;  %v849_v8 = vshra.s32 %v833_v3, 4  ;;  %v2796_v15 = vshra.s32 %v2784_v1, 2  ;;  %v937_v16 = vstv %s810_s10  ;;  %v851_v18 = vshra.s32 %v835_v9, 4 }
  0x6a   : > { %2259 = vmatprep.subr.msk.mxu0 %vm3649_vm2, %v561_v37  ;;  %v885_v2 = vstv %s884_s30  ;;  %vm938_vm3 = vcmp.ge.s32.totalorder %v2784_v1, %v937_v16  ;;  %v867_v22 = vshra.s32 %v848_v12, 2  ;;  %v850_v23 = vshra.s32 %v834_v13, 4 }
  0x6b   : > { %v886_v5 = vadd.s32 %v885_v2, %v2784_v1  ;;  %v868_v14 = vshra.s32 %v849_v8, 2  ;;  %vm890_vm5 = vcmp.le.s32.totalorder %v2784_v1, %v849_v8  ;;  %v870_v25 = vshra.s32 %v851_v18, 2 }
  0x6c   : > { %v853_v26 = vshra.s32 %v837_v19, 4  ;;  %v839_v27 = vadd.s32 %v2782_v0, %v819_v20  ;;  %v818_v28 = vadd.s32 48, %v2778_v61  ;;  %v821_v30 = vadd.s32 72, %v2778_v61 }
  0x6d   : > { %2260 = vmatpush3.xpose.msk.msra.mxu0 %vm3649_vm2, %v561_v37  ;;  %v887_v11 = vand.u32 3, %v886_v5  ;;  %vm906_vm6 = vcmp.eq.s32.totalorder %v2796_v15, %v868_v14  ;;  %vm889_vm9 = vcmp.le.s32.totalorder %v2784_v1, %v848_v12  ;;  %vm905_vm10 = vcmp.eq.s32.totalorder %v2796_v15, %v867_v22 }
  0x6e   : > { %2261 = vmatprep.subr.msk.mxu0 %vm3649_vm2, %v560_v38  ;;  %v869_v31 = vshra.s32 %v850_v23, 2  ;;  %vm2818_vm11 = vmand %vm890_vm5, %vm906_vm6  ;;  %vm892_vm13 = vcmp.le.s32.totalorder %v2784_v1, %v851_v18  ;;  %v852_v33 = vshra.s32 %v836_v24, 4  ;;  %vm908_vm15 = vcmp.eq.s32.totalorder %v2796_v15, %v870_v25 }
  0x6f   : > { %v2802_v21 = vsub.s32 %v2784_v1, %v887_v11  ;;  %vm939_vm4 = vcmp.lt.s32.totalorder %v887_v11, 1  ;;  %v872_v35 = vshra.s32 %v853_v26, 2  ;;  %v855_v36 = vshra.s32 %v839_v27, 4  ;;  %vm2832_vm0 = vmand %vm889_vm9, %vm905_vm10 }
  0x70   : > { %vm2810_vm7 = vmand %vm938_vm3, %vm939_vm4  ;;  %v838_v37 = vadd.s32 %v2782_v0, %v818_v28  ;;  %vm891_vm4 = vcmp.le.s32.totalorder %v2784_v1, %v850_v23  ;;  %vm907_vm5 = vcmp.eq.s32.totalorder %v2796_v15, %v869_v31  ;;  %vm894_vm10 = vcmp.le.s32.totalorder %v2784_v1, %v853_v26 }
  0x71   : > { %2262 = vmatpush3.xpose.msk.msra.mxu0 %vm3649_vm2, %v560_v38  ;;  %vm942_vm8 = vcmp.lt.s32.totalorder %v2802_v21, %v849_v8  ;;  %vm941_vm12 = vcmp.lt.s32.totalorder %v2802_v21, %v848_v12  ;;  %v3681_v38 = vmov 0  ;;  %vm944_vm1 = vcmp.lt.s32.totalorder %v2802_v21, %v851_v18  ;;  %vm2850_vm6 = vmand %vm892_vm13, %vm908_vm15 }
  0x72   : > { %2263 = vmatprep.subr.msk.mxu0 %vm3649_vm2, %v559_v39  ;;  %vm2826_vm14 = vmand %vm2810_vm7, %vm942_vm8  ;;  %v3682_v38 = vsel %vm2832_vm0, 4294967295, %v3681_v38  ;;  %vm943_vm8 = vcmp.lt.s32.totalorder %v2802_v21, %v850_v23  ;;  %v825_v60 = vadd.s32 104, %v2778_v61  ;;  %v3701_v62 = vmov 0 }
  0x73   : > { %vm2841_vm3 = vmand %vm2810_vm7, %vm941_vm12  ;;  %vm910_vm12 = vcmp.eq.s32.totalorder %v2796_v15, %v872_v35  ;;  %v824_v4 = vadd.s32 96, %v2778_v61  ;;  %v3705_v5 = vmov 0  ;;  %v3707_v9 = vmov 0 }
  0x74   : > { %vm2857_vm9 = vmand %vm2810_vm7, %vm944_vm1  ;;  %vm946_vm1 = vcmp.lt.s32.totalorder %v2802_v21, %v853_v26  ;;  %v845_v8 = vadd.s32 %v2782_v0, %v825_v60  ;;  %v827_v18 = vadd.s32 120, %v2778_v61  ;;  %v3717_v22 = vmov 0 }
  0x75   : > { %2264 = vmatpush3.xpose.msk.msra.mxu0 %vm3649_vm2, %v559_v39  ;;  %v841_v39 = vadd.s32 %v2782_v0, %v821_v30  ;;  %vm2867_vm15 = vmand %vm891_vm4, %vm907_vm5  ;;  %vm896_vm4 = vcmp.le.s32.totalorder %v2784_v1, %v855_v36  ;;  %v844_v14 = vadd.s32 %v2782_v0, %v824_v4  ;;  %v826_v28 = vadd.s32 112, %v2778_v61 }
  0x76   : > { %2265 = vmatprep.subr.msk.mxu0 %vm3649_vm2, %v558_v40  ;;  %v861_v24 = vshra.s32 %v845_v8, 4  ;;  %v3767_v2 = vmov 0  ;;  %v2537_v4 = vmov 0  }
  0x77   : > { %v860_v34 = vshra.s32 %v844_v14, 4  ;;  %2380 = vset.pattern.permute.xlu0 %v2537_v4  ;;  %2381 = vset.pattern.permute.xlu1 %v2537_v4 }
  0x79   : > { %2266 = vmatpush3.xpose.msk.msra.mxu0 %vm3649_vm2, %v558_v40  ;;  %v820_v40 = vadd.s32 64, %v2778_v61 }
  0x7a   : > { %2267 = vmatprep.subr.msk.mxu0 %vm3649_vm2, %v557_v41 }
  0x7d   : > { %2268 = vmatpush3.xpose.msk.msra.mxu0 %vm3649_vm2, %v557_v41  ;;  %v3683_v41 = vmov 0 }
  0x7e   : > { %2269 = vmatprep.subr.msk.mxu0 %vm3649_vm2, %v556_v42  ;;  %v3684_v41 = vsel %vm2841_vm3, 4294967295, %v3683_v41  ;;  %vm2889_vm3 = vmand %vm894_vm10, %vm910_vm12 }
  0x81   : > { %2270 = vmatpush3.xpose.msk.msra.mxu0 %vm3649_vm2, %v556_v42  ;;  %v823_v42 = vadd.s32 88, %v2778_v61 }
  0x84   : > { %2272 = vmatmul.mubr.msk.f32.vlgmr.msra.gmra.mxu0 %vm3649_vm2, %v574_v43  ;;  %v3685_v43 = vmov 0 }
  0x85   : > { %2274 = vmatprep.mubr.msk.f32.mxu0 %vm3649_vm2, %v575_v44  ;;  %v3686_v43 = vsel %vm2850_vm6, 4294967295, %v3685_v43  ;;  %v871_v44 = vshra.s32 %v852_v33, 2  ;;  %vm945_vm6 = vcmp.lt.s32.totalorder %v2802_v21, %v852_v33 }
  0x87   : > { %vm909_vm0 = vcmp.eq.s32.totalorder %v2796_v15, %v871_v44  ;;  %v846_v44 = vadd.s32 %v2782_v0, %v826_v28 }
  0x88   : > { %2275 = vmatmul.mubr.msk.f32.gmra.mxu0 %vm3649_vm2, %v576_v45  ;;  %v3687_v45 = vmov 0 }
  0x89   : > { %2277 = vmatprep.mubr.msk.f32.mxu0 %vm3649_vm2, %v577_v46  ;;  %v3688_v45 = vsel %vm2857_vm9, 4294967295, %v3687_v45  ;;  %v874_v46 = vshra.s32 %v855_v36, 2  ;;  %vm2910_vm9 = vmand %vm2810_vm7, %vm945_vm6 }
  0x8b   : > { %vm912_vm13 = vcmp.eq.s32.totalorder %v2796_v15, %v874_v46  ;;  %v572_v46 = vld [vmem:[%s3282_s28 + $0x38] sm:$0xff] }
  0x8c   : > { %2278 = vmatmul.mubr.msk.f32.gmra.mxu0 %vm3649_vm2, %v578_v47  ;;  %v854_v47 = vshra.s32 %v838_v37, 4  ;;  %vm2924_vm6 = vmand %vm896_vm4, %vm912_vm13  ;;  %2295 = vmatprep.subr.mxu1 %v572_v46 }
  0x8d   : > { %2280 = vmatprep.mubr.msk.f32.mxu0 %vm3649_vm2, %v579_v48  ;;  %v3689_v48 = vmov 0  ;;  %2296 = vmatpush3.msra.mxu1 %v572_v46  ;;  %v3361_v46 = vld [vmem:[#allocation2 + $0x70] sm:$0xff] }
  0x8e   : > { %v3690_v48 = vsel %vm2867_vm15, 4294967295, %v3689_v48  ;;  %vm2898_vm15 = vmand %vm2810_vm7, %vm946_vm1  ;;  %vm948_vm1 = vcmp.lt.s32.totalorder %v2802_v21, %v855_v36  ;;  %v847_v36 = vadd.s32 %v2782_v0, %v827_v18 }
  0x90   : > { %2281 = vmatmul.mubr.msk.f32.gmra.mxu0 %vm3649_vm2, %v580_v49  ;;  %v857_v49 = vshra.s32 %v841_v39, 4 }
  0x91   : > { %2283 = vmatprep.mubr.msk.f32.mxu0 %vm3649_vm2, %v581_v50  ;;  %v840_v50 = vadd.s32 %v2782_v0, %v820_v40  ;;  %v3740_v40 = vmov 0 }
  0x92   : > { %v876_v58 = vshra.s32 %v857_v49, 2  ;;  %vm898_vm4 = vcmp.le.s32.totalorder %v2784_v1, %v857_v49 }
  0x93   : > { %v856_v59 = vshra.s32 %v840_v50, 4 }
  0x94   : > { %2284 = vmatmul.mubr.msk.f32.gmra.mxu0 %vm3649_vm2, %v582_v51  ;;  %v3691_v51 = vmov 0 }
  0x95   : > { %2286 = vmatprep.mubr.msk.f32.mxu0 %vm3649_vm2, %v583_v52  ;;  %v843_v52 = vadd.s32 %v2782_v0, %v823_v42  ;;  %v875_v7 = vshra.s32 %v856_v59, 2  ;;  %vm949_vm13 = vcmp.lt.s32.totalorder %v2802_v21, %v856_v59 }
  0x97   : > { %v859_v63 = vshra.s32 %v843_v52, 4 }
  0x98   : > { %2287 = vmatmul.mubr.msk.f32.gmra.mxu0 %vm3649_vm2, %v584_v53  ;;  %v3694_v53 = vmov 0 }
  0x99   : > { %2289 = vmatprep.mubr.msk.f32.mxu0 %vm3649_vm2, %v585_v54  ;;  %v3695_v53 = vsel %vm2889_vm3, 4294967295, %v3694_v53  ;;  %v822_v54 = vadd.s32 80, %v2778_v61  ;;  %vm950_vm3 = vcmp.lt.s32.totalorder %v2802_v21, %v857_v49  ;;  %v878_v10 = vshra.s32 %v859_v63, 2 }
  0x9b   : > { %v842_v3 = vadd.s32 %v2782_v0, %v822_v54  ;;  %v862_v54 = vshra.s32 %v846_v44, 4 }
  0x9c   : > { %2290 = vmatmul.mubr.msk.f32.gmra.mxu0 %vm3649_vm2, %v586_v55  ;;  %v3696_v55 = vmov 0 }
  0x9d   : > { %2292 = vmatprep.mubr.msk.f32.mxu0 %vm3649_vm2, %v587_v56  ;;  %v3697_v55 = vsel %vm2898_vm15, 4294967295, %v3696_v55  ;;  %v873_v56 = vshra.s32 %v854_v47, 2  ;;  %vm914_vm15 = vcmp.eq.s32.totalorder %v2796_v15, %v876_v58  ;;  %v858_v13 = vshra.s32 %v842_v3, 4 }
  0x9f   : > { %vm911_vm12 = vcmp.eq.s32.totalorder %v2796_v15, %v873_v56 }
  0xa0   : > { %2293 = vmatmul.mubr.msk.f32.gmra.mxu0 %vm3649_vm2, %v588_v57  ;;  %vm2875_vm2 = vmand %vm2810_vm7, %vm943_vm8  ;;  %vm893_vm8 = vcmp.le.s32.totalorder %v2784_v1, %v852_v33  ;;  %v3699_v57 = vmov 0  ;;  %v877_v33 = vshra.s32 %v858_v13, 2 }
  0xa1   : > { %v3692_v51 = vsel %vm2875_vm2, 4294967295, %v3691_v51  ;;  %v3700_v57 = vsel %vm2910_vm9, 4294967295, %v3699_v57  ;;  %vm2916_vm5 = vmand %vm893_vm8, %vm909_vm0  ;;  %vm947_vm2 = vcmp.lt.s32.totalorder %v2802_v21, %v854_v47  ;;  %vm895_vm8 = vcmp.le.s32.totalorder %v2784_v1, %v854_v47 }
  0xa2   : > { %v3702_v62 = vsel %vm2916_vm5, 4294967295, %v3701_v62  ;;  %vm2933_vm0 = vmand %vm2810_vm7, %vm948_vm1  ;;  %vm3712_vm5 = vnez %v3684_v41  ;;  %v880_v41 = vshra.s32 %v861_v24, 2  ;;  %v879_v47 = vshra.s32 %v860_v34, 2 }
  0xa3   : > { %v3706_v5 = vsel %vm2933_vm0, 4294967295, %v3705_v5  ;;  %vm2948_vm1 = vmand %vm2810_vm7, %vm947_vm2  ;;  %vm3711_vm2 = vnez %v3682_v38 }
  0xa4   : > { %v3708_v9 = vsel %vm2948_vm1, 4294967295, %v3707_v9  ;;  %vm2957_vm9 = vmand %vm895_vm8, %vm911_vm12  ;;  %vm3716_vm8 = vcmask 523264   ;;  %vm3737_vm12 = vcmask 523264  }
  0xa5   : > { %vm3713_vm10 = vmor %vm3711_vm2, %vm3712_vm5  ;;  %vm2986_vm5 = vcmp.eq.s32.totalorder %v2796_v15, %v875_v7  ;;  %v881_v7 = vshra.s32 %v862_v54, 2 }
  0xa6   : > { %vm2969_vm1 = vmand %vm898_vm4, %vm914_vm15  ;;  %vm3723_vm4 = vnez %v3688_v45  ;;  %vm3009_vm15 = vcmp.eq.s32.totalorder %v2796_v15, %v878_v10 }
  0xa7   : > { %vm2980_vm0 = vmand %vm2810_vm7, %vm950_vm3  ;;  %vm3722_vm3 = vnez %v3686_v43  ;;  %v3745_v43 = vmov 0 }
  0xa8   : > { %v3718_v22 = vsel %vm2980_vm0, 4294967295, %v3717_v22  ;;  %vm3724_vm2 = vmor %vm3722_vm3, %vm3723_vm4  ;;  %vm3731_vm3 = vnez %v3690_v48  ;;  %vm3732_vm4 = vnez %v3692_v51  ;;  %v863_v48 = vshra.s32 %v847_v36, 4  ;;  %v3265_v36 = vld [vmem:[#allocation2] sm:$0xff] }
  0xaa   : > { %v882_v60 = vshra.s32 %v863_v48, 2 }
 0x144   : > { %v2273_v6 = vpop.f32.mrf.mxu0 }
 0x146   : > { %v728_v11 = vpop.f32.mrf.mxu0 }
 0x147   : > { %v2967_v16 = vsel %vm3713_vm10, %v728_v11, -1e+30  ;;  %vm3721_vm10 = vmor %vm2818_vm11, %vm2826_vm14  ;;  %vm3728_vm11 = vcmask 523264  }
 0x148   : > { %v2276_v19 = vpop.f32.mrf.mxu0  ;;  %v1023_v20 = vsel %vm3716_vm8, %v2967_v16, -inf  ;;  %v2995_v25 = vsel %vm3721_vm10, %v2273_v6, -1e+30  ;;  %vm3020_vm14 = vmand %vm2810_vm7, %vm949_vm13  ;;  %vm952_vm10 = vcmp.lt.s32.totalorder %v2802_v21, %v859_v63 }
 0x149   : > { %v3002_v26 = vsel %vm3724_vm2, %v2276_v19, -1e+30  ;;  %1024 = vmax.xlane.f32.xlu0 %v1023_v20  ;;  %v3730_v32 = vsel %vm3020_vm14, 4294967295, %v3729_v32  ;;  %vm3733_vm2 = vmor %vm3731_vm3, %vm3732_vm4  ;;  %v1026_v37 = vsel %vm3737_vm12, %v2995_v25, -inf  ;;  %vm3739_vm3 = vcmp.le.s32.totalorder %v2784_v1, %v859_v63 }
 0x14a   : > { %v1032_v30 = vsel %vm3728_vm11, %v3002_v26, -inf  ;;  %v738_v31 = vpop.f32.mrf.mxu0  ;;  %vm3734_vm11 = vcmp.le.s32.totalorder %v2784_v1, %v856_v59  ;;  %vm3738_vm8 = vmmov %vm3737_vm12  ;;  %v3764_v59 = vmov 0 }
 0x14b   : > { %1033 = vmax.xlane.f32.xlu1 %v1032_v30  ;;  %v3030_v61 = vsel %vm3733_vm2, %v738_v31, -1e+30  ;;  %vm3036_vm13 = vmand %vm3734_vm11, %vm2986_vm5  ;;  %vm3742_vm5 = vnez %v3695_v53  ;;  %vm3743_vm2 = vnez %v3697_v55  ;;  %v3301_v53 = vld [vmem:[#allocation2 + $0x28] sm:$0xff] }
 0x14c   : > { %v1029_v38 = vsel %vm3738_vm8, %v3030_v61, -inf  ;;  %v2279_v39 = vpop.f32.mrf.mxu0  ;;  %vm3049_vm4 = vmand %vm3739_vm3, %vm3009_vm15  ;;  %vm3073_vm3 = vcmp.eq.s32.totalorder %v2796_v15, %v877_v33  ;;  %vm951_vm15 = vcmp.lt.s32.totalorder %v2802_v21, %v858_v13 }
 0x14d   : > { %v3741_v40 = vsel %vm3049_vm4, 4294967295, %v3740_v40  ;;  %1027 = vmax.xlane.f32.xlu0 %v1026_v37  ;;  %vm3744_vm11 = vmor %vm3742_vm5, %vm3743_vm2  ;;  %vm3750_vm5 = vnez %v3700_v57 }
 0x14e   : > { %v3058_v42 = vsel %vm3744_vm11, %v2279_v39, -1e+30  ;;  %vm3062_vm12 = vmand %vm2810_vm7, %vm952_vm10  ;;  %v748_v45 = vpop.f32.mrf.mxu0  ;;  %vm3749_vm10 = vnez %v3702_v62  ;;  %vm3753_vm11 = vnez %v3706_v5 }
 0x14f   : > { %v3746_v43 = vsel %vm3062_vm12, 4294967295, %v3745_v43  ;;  %1030 = vmax.xlane.f32.xlu1 %v1029_v38  ;;  %vm3751_vm2 = vmor %vm3749_vm10, %vm3750_vm5  ;;  %v1038_v49 = vsel %vm3738_vm8, %v3058_v42, -inf  ;;  %vm902_vm5 = vcmp.le.s32.totalorder %v2784_v1, %v861_v24  ;;  %vm954_vm10 = vcmp.lt.s32.totalorder %v2802_v21, %v861_v24  ;;  %v3267_v38 = vld [vmem:[#allocation2 + $0x18] sm:$0xff] }
 0x150   : > { %v3082_v0 = vsel %vm3751_vm2, %v748_v45, -1e+30  ;;  %v2282_v50 = vpop.f32.mrf.mxu0  ;;  %vm3752_vm0 = vmmov %vm3738_vm8  ;;  %vm918_vm2 = vcmp.eq.s32.totalorder %v2796_v15, %v880_v41  ;;  %v3272_v41 = vld [vmem:[#allocation2 + $0x8] sm:$0xff]  ;;  %v3284_v45 = vld [vmem:[#allocation2 + $0x10] sm:$0xff] }
 0x151   : > { %v1035_v51 = vsel %vm3752_vm0, %v3082_v0, -inf  ;;  %vm3754_vm14 = vmor %vm2924_vm6, %vm3753_vm11  ;;  %vm3755_vm0 = vcmp.le.s32.totalorder %v2784_v1, %v858_v13  ;;  %vm3766_vm6 = vcmask 523264  }
 0x152   : > { %v3104_v52 = vsel %vm3754_vm14, %v2282_v50, -1e+30  ;;  %1036 = vmax.xlane.f32.xlu0 %v1035_v51  ;;  %vm3110_vm8 = vmand %vm3755_vm0, %vm3073_vm3  ;;  %v758_v55 = vpop.f32.mrf.mxu0  ;;  %vm3123_vm14 = vcmp.eq.s32.totalorder %v2796_v15, %v879_v47  ;;  %vm3762_vm3 = vnez %v3708_v9  ;;  %v571_v50 = vld [vmem:[%s3282_s28 + $0x30] sm:$0xff] }
 0x153   : > { %vm3117_vm12 = vmand %vm2810_vm7, %vm951_vm15  ;;  %1039 = vmax.xlane.f32.xlu1 %v1038_v49  ;;  %vm953_vm15 = vcmp.lt.s32.totalorder %v2802_v21, %v860_v34  ;;  %v1044_v62 = vsel %vm3766_vm6, %v3104_v52, -inf  ;;  %v3292_v49 = vld [vmem:[#allocation2 + $0x20] sm:$0xff]  ;;  %2297 = vmatprep.subr.mxu1 %v571_v50 }
 0x154   : > { %vm3763_vm11 = vmor %vm2957_vm9, %vm3762_vm3  ;;  %v2285_v63 = vpop.f32.mrf.mxu0  ;;  %2298 = vmatpush3.msra.mxu1 %v571_v50 }
 0x155   : > { %v3132_v58 = vsel %vm3763_vm11, %v758_v55, -1e+30  ;;  %vm3134_vm0 = vmand %vm902_vm5, %vm918_vm2  ;;  %vm3770_vm5 = vnez %v3718_v22  ;;  %v570_v55 = vld [vmem:[%s3282_s28 + $0x28] sm:$0xff] }
 0x156   : > { %v3765_v59 = vsel %vm3134_vm0, 4294967295, %v3764_v59  ;;  %vm3143_vm4 = vmand %vm2810_vm7, %vm954_vm10  ;;  %vm3772_vm10 = vcmp.le.s32.totalorder %v2784_v1, %v860_v34  ;;  %v768_v8 = vpop.f32.mrf.mxu0  ;;  %2299 = vmatprep.subr.mxu1 %v570_v55 }
 0x157   : > { %v3768_v2 = vsel %vm3143_vm4, 4294967295, %v3767_v2  ;;  %vm3769_vm9 = vmmov %vm3766_vm6  ;;  %1045 = vmax.xlane.f32.xlu1 %v1044_v62  ;;  %vm919_vm4 = vcmp.eq.s32.totalorder %v2796_v15, %v881_v7  ;;  %2300 = vmatpush3.msra.mxu1 %v570_v55  ;;  %v3323_v7 = vld [vmem:[#allocation2 + $0x40] sm:$0xff] }
 0x158   : > { %v1041_v3 = vsel %vm3769_vm9, %v3132_v58, -inf  ;;  %vm3771_vm2 = vmor %vm2969_vm1, %vm3770_vm5  ;;  %vm3777_vm1 = vnez %v3730_v32  ;;  %vm904_vm9 = vcmp.le.s32.totalorder %v2784_v1, %v863_v48  ;;  %vm3779_vm5 = vcmask 523264   ;;  %v2288_v12 = vpop.f32.mrf.mxu0 }
 0x159   : > { %v3154_v5 = vsel %vm3771_vm2, %v2285_v63, -1e+30  ;;  %1042 = vmax.xlane.f32.xlu0 %v1041_v3  ;;  %vm3160_vm6 = vmand %vm3772_vm10, %vm3123_vm14  ;;  %vm956_vm2 = vcmp.lt.s32.totalorder %v2802_v21, %v863_v48  ;;  %v3316_v63 = vld [vmem:[#allocation2 + $0x38] sm:$0xff] }
 0x15a   : > { %vm3166_vm3 = vmand %vm2810_vm7, %vm953_vm15  ;;  %vm920_vm15 = vcmp.eq.s32.totalorder %v2796_v15, %v882_v60  ;;  %v1050_v11 = vsel %vm3779_vm5, %v3154_v5, -inf  ;;  %v778_v17 = vpop.f32.mrf.mxu0  ;;  %v569_v60 = vld [vmem:[%s3282_s28 + $0x20] sm:$0xff]  ;;  %v568_v3 = vld [vmem:[%s3282_s28 + $0x18] sm:$0xff] }
 0x15b   : > { %vm3778_vm11 = vmor %vm3036_vm13, %vm3777_vm1  ;;  %vm3781_vm1 = vnez %v3741_v40  ;;  %vm903_vm13 = vcmp.le.s32.totalorder %v2784_v1, %v862_v54  ;;  %1051 = vmax.xlane.f32.xlu1 %v1050_v11  ;;  %2301 = vmatprep.subr.mxu1 %v569_v60 }
 0x15c   : > { %v3175_v10 = vsel %vm3778_vm11, %v768_v8, -1e+30  ;;  %vm3780_vm10 = vmmov %vm3779_vm5  ;;  %vm3782_vm11 = vnez %v3746_v43  ;;  %v2291_v20 = vpop.f32.mrf.mxu0  ;;  %2302 = vmatpush3.msra.mxu1 %v569_v60  ;;  %v567_v8 = vld [vmem:[%s3282_s28 + $0x10] sm:$0xff] }
 0x15d   : > { %v1047_v13 = vsel %vm3780_vm10, %v3175_v10, -inf  ;;  %vm3783_vm14 = vmor %vm3781_vm1, %vm3782_vm11  ;;  %vm955_vm10 = vcmp.lt.s32.totalorder %v2802_v21, %v862_v54  ;;  %2303 = vmatprep.subr.mxu1 %v568_v3 }
 0x15e   : > { %v3197_v14 = vsel %vm3783_vm14, %v2288_v12, -1e+30  ;;  %vm987_vm5 = vmor %vm3160_vm6, %vm3166_vm3  ;;  %1048 = vmax.xlane.f32.xlu0 %v1047_v13  ;;  %v788_v24 = vpop.f32.mrf.mxu0  ;;  %vm1359_vm3 = vcmask 7168   ;;  %2304 = vmatpush3.msra.mxu1 %v568_v3  ;;  %v3332_v12 = vld [vmem:[#allocation2 + $0x48] sm:$0xff] }
 0x15f   : > { %vm3205_vm0 = vmand %vm904_vm9, %vm920_vm15  ;;  %vm3789_vm9 = vcmask 523264   ;;  %v3249_v27 = vsel %vm987_vm5, %v788_v24, -1e+30  ;;  %2305 = vmatprep.subr.mxu1 %v567_v8 }
 0x160   : > { %vm3786_vm14 = vmor %vm3110_vm8, %vm3117_vm12  ;;  %v1056_v15 = vsel %vm3789_vm9, %v3197_v14, -inf  ;;  %vm3793_vm12 = vnez %v3765_v59  ;;  %vm3794_vm8 = vnez %v3768_v2  ;;  %v2294_v30 = vpop.f32.mrf.mxu0  ;;  %v3309_v59 = vld [vmem:[#allocation2 + $0x30] sm:$0xff]  ;;  %2306 = vmatpush3.msra.mxu1 %v567_v8 }
 0x161   : > { %v3215_v19 = vsel %vm3786_vm14, %v778_v17, -1e+30  ;;  %vm3219_vm1 = vmand %vm2810_vm7, %vm956_vm2  ;;  %1057 = vmax.xlane.f32.xlu1 %v1056_v15  ;;  %v566_v17 = vld [vmem:[%s3282_s28 + $0x8] sm:$0xff]  ;;  %v3339_v15 = vld [vmem:[#allocation2 + $0x50] sm:$0xff] }
 0x162   : > { %vm3790_vm15 = vmmov %vm3789_vm9  ;;  %v798_v32 = vpop.f32.mrf.mxu0  ;;  %2307 = vmatprep.subr.mxu1 %v566_v17 }
 0x163   : > { %v1053_v21 = vsel %vm3790_vm15, %v3215_v19, -inf  ;;  %vm3227_vm11 = vmand %vm903_vm13, %vm919_vm4  ;;  %2308 = vmatpush3.msra.mxu1 %v566_v17 }
 0x164   : > { %vm3795_vm14 = vmor %vm3793_vm12, %vm3794_vm8  ;;  %1054 = vmax.xlane.f32.xlu0 %v1053_v21 }
 0x165   : > { %v3236_v23 = vsel %vm3795_vm14, %v2291_v20, -1e+30  ;;  %vm973_vm2 = vmand %vm2810_vm7, %vm955_vm10  ;;  %v565_v20 = vld [vmem:[%s3282_s28] sm:$0xff] }
 0x166   : > { %vm990_vm4 = vmor %vm3205_vm0, %vm3219_vm1  ;;  %2309 = vmatprep.subr.mxu1 %v565_v20 }
 0x167   : > { %vm3796_vm13 = vmmov %vm3789_vm9  ;;  %v3257_v31 = vsel %vm990_vm4, %v2294_v30, -1e+30  ;;  %2310 = vmatpush3.msra.mxu1 %v565_v20 }
 0x168   : > { %v1062_v28 = vsel %vm3796_vm13, %v3236_v23, -inf  ;;  %vm3797_vm7 = vmmov %vm3789_vm9 }
 0x169   : > { %v1059_v29 = vsel %vm3797_vm7, %v3249_v27, -inf  ;;  %vm989_vm10 = vmor %vm3227_vm11, %vm973_vm2  ;;  %1063 = vmax.xlane.f32.xlu1 %v1062_v28  ;;  %v1018_v28 = vld [vmem:[#allocation2 + $0x58] sm:$0xff] }
 0x16a   : > { %1060 = vmax.xlane.f32.xlu0 %v1059_v29  ;;  %v3259_v33 = vsel %vm989_vm10, %v798_v32, -1e+30  ;;  %vm3798_vm0 = vmmov %vm3797_vm7 }
 0x16b   : > { %v1068_v34 = vsel %vm3798_vm0, %v3257_v31, -inf  ;;  %vm3799_vm6 = vmmov %vm3798_vm0 }
 0x16c   : > { %v1065_v35 = vsel %vm3799_vm6, %v3259_v33, -inf  ;;  %vm3800_vm5 = vmmov %vm3798_vm0 }
 0x16d   : > { %1069 = vmax.xlane.f32.xlu1 %v1068_v34  ;;  %vm3801_vm1 = vmmov %vm3798_vm0 }
 0x16e   : > { %1066 = vmax.xlane.f32.xlu0 %v1065_v35  ;;  %v3352_v35 = vld [vmem:[#allocation2 + $0x60] sm:$0xff]  ;;  %vm3802_vm9 = vmmov %vm3798_vm0 }
 0x16f   : > { %vm3803_vm15 = vmmov %vm3798_vm0 }
 0x170   : > { %vm3804_vm11 = vmmov %vm3798_vm0 }
 0x171   : > { %vm3805_vm12 = vmmov %vm3798_vm0 }
 0x172   : > { %vm3806_vm8 = vmmov %vm3798_vm0 }
 0x173   : > { %vm3807_vm14 = vmmov %vm3798_vm0 }
 0x174   : > { %vm3808_vm2 = vmmov %vm3798_vm0 }
 0x175   : > { %vm3809_vm4 = vmmov %vm3798_vm0 }
 0x176   : > { %vm3810_vm13 = vmmov %vm3798_vm0 }
 0x177   : > { %vm3811_vm7 = vmmov %vm3798_vm0 }
 0x178   : > { %vm3812_vm10 = vmmov %vm3798_vm0 }
 0x179   : > { %vm3813_vm6 = vmmov %vm3798_vm0 }
 0x1d2   : > { %v1025_v37 = vpop.xlane.xlu0 %1024 }
 0x1d3   : > { %v3270_v39 = vmax.f32 %v3265_v36, %v1025_v37 }
 0x1d4   : > { %v1034_v40 = vpop.xlane.xlu1 %1033 }
 0x1d5   : > { %1713 = vst.msk [vmem:[#allocation2] sm:$0xff] %vm1359_vm3, %v3270_v39  ;;  %v3277_v43 = vmax.f32 %v3267_v38, %v1034_v40  ;;  %1089 = vperm.xlu0 %2380, %v3270_v39   ;;  %v1215_v9 = vsub.f32 %v3265_v36, %v3270_v39 }
 0x1d6   : > { %v1028_v44 = vpop.xlane.xlu0 %1027 }
 0x1d7   : > { %1716 = vst.msk [vmem:[#allocation2 + $0x18] sm:$0xff] %vm1359_vm3, %v3277_v43  ;;  %v3290_v47 = vmax.f32 %v3272_v41, %v1028_v44  ;;  %v1231_v21 = vmul.f32 1.442695, %v1215_v9  ;;  %v1218_v22 = vsub.f32 %v3267_v38, %v3277_v43  ;;  %v1020_v38 = vld [vmem:[#allocation2 + $0x68] sm:$0xff] }
 0x1d8   : > { %v1031_v48 = vpop.xlane.xlu1 %1030 }
 0x1d9   : > { %1714 = vst.msk [vmem:[#allocation2 + $0x8] sm:$0xff] %vm1359_vm3, %v3290_v47  ;;  %v3298_v51 = vmax.f32 %v3284_v45, %v1031_v48  ;;  %1094 = vperm.xlu1 %2381, %v3290_v47   ;;  %2382 = vpow2.f32 %v1231_v21  ;;  %v1237_v36 = vmul.f32 1.442695, %v1218_v22  ;;  %v1216_v55 = vsub.f32 %v3272_v41, %v3290_v47 }
 0x1db   : > { %v1037_v54 = vpop.xlane.xlu0 %1036  ;;  %1715 = vst.msk [vmem:[#allocation2 + $0x10] sm:$0xff] %vm1359_vm3, %v3298_v51  ;;  %2384 = vpow2.f32 %v1237_v36  ;;  %v1233_v41 = vmul.f32 1.442695, %v1216_v55  ;;  %v1217_v47 = vsub.f32 %v3284_v45, %v3298_v51 }
 0x1dc   : > { %v3307_v56 = vmax.f32 %v3292_v49, %v1037_v54  ;;  %v1040_v57 = vpop.xlane.xlu1 %1039 }
 0x1dd   : > { %v1076_v62 = vmax.f32 %v3301_v53, %v1040_v57  ;;  %1104 = vperm.xlu1 %2381, %v3277_v43  }
 0x1de   : > { %1717 = vst.msk [vmem:[#allocation2 + $0x20] sm:$0xff] %vm1359_vm3, %v3307_v56  ;;  %v1219_v45 = vsub.f32 %v3292_v49, %v3307_v56 }
 0x1df   : > { %1718 = vst.msk [vmem:[#allocation2 + $0x28] sm:$0xff] %vm1359_vm3, %v1076_v62  ;;  %v1220_v32 = vsub.f32 %v3301_v53, %v1076_v62  ;;  %v3366_v53 = vld [vmem:[#allocation2 + $0x78] sm:$0xff] }
 0x1e0   : > { %v1046_v6 = vpop.xlane.xlu1 %1045 }
 0x1e1   : > { %v1078_v11 = vmax.f32 %v3316_v63, %v1046_v6  ;;  %1099 = vperm.xlu1 %2381, %v3298_v51   ;;  %v1241_v43 = vmul.f32 1.442695, %v1220_v32 }
 0x1e2   : > { %v1043_v2 = vpop.xlane.xlu0 %1042 }
 0x1e3   : > { %v3321_v4 = vmax.f32 %v3309_v59, %v1043_v2  ;;  %1720 = vst.msk [vmem:[#allocation2 + $0x38] sm:$0xff] %vm1359_vm3, %v1078_v11  ;;  %v1222_v48 = vsub.f32 %v3316_v63, %v1078_v11  ;;  %2386 = vpow2.f32 %v1241_v43 }
 0x1e4   : > { %v1052_v1 = vpop.xlane.xlu1 %1051 }
 0x1e5   : > { %1719 = vst.msk [vmem:[#allocation2 + $0x30] sm:$0xff] %vm1359_vm3, %v3321_v4  ;;  %v1080_v24 = vmax.f32 %v3332_v12, %v1052_v1  ;;  %1114 = vperm.xlu1 %2381, %v1076_v62   ;;  %v1245_v62 = vmul.f32 1.442695, %v1222_v48  ;;  %v1239_v1 = vmul.f32 1.442695, %v1219_v45  ;;  %v1221_v20 = vsub.f32 %v3309_v59, %v3321_v4 }
 0x1e7   : > { %v1049_v13 = vpop.xlane.xlu0 %1048  ;;  %1722 = vst.msk [vmem:[#allocation2 + $0x48] sm:$0xff] %vm1359_vm3, %v1080_v24  ;;  %1134 = vperm.xlu0 %2380, %v1080_v24   ;;  %v1224_v63 = vsub.f32 %v3332_v12, %v1080_v24  ;;  %2388 = vpow2.f32 %v1245_v62  ;;  %v1235_v12 = vmul.f32 1.442695, %v1217_v47 }
 0x1e8   : > { %v3337_v18 = vmax.f32 %v3323_v7, %v1049_v13  ;;  %2390 = vpow2.f32 %v1233_v41 }
 0x1e9   : > { %1109 = vperm.xlu1 %2381, %v3307_v56   ;;  %v1249_v8 = vmul.f32 1.442695, %v1224_v63  ;;  %v1243_v56 = vmul.f32 1.442695, %v1221_v20 }
 0x1ea   : > { %1721 = vst.msk [vmem:[#allocation2 + $0x40] sm:$0xff] %vm1359_vm3, %v3337_v18  ;;  %v1058_v34 = vpop.xlane.xlu1 %1057  ;;  %v1223_v22 = vsub.f32 %v3323_v7, %v3337_v18 }
 0x1eb   : > { %v1082_v37 = vmax.f32 %v1018_v28, %v1058_v34  ;;  %2392 = vpow2.f32 %v1249_v8 }
 0x1ec   : > { %2394 = vpow2.f32 %v1235_v12  ;;  %v1247_v59 = vmul.f32 1.442695, %v1223_v22 }
 0x1ed   : > { %v1055_v30 = vpop.xlane.xlu0 %1054  ;;  %1724 = vst.msk [vmem:[#allocation2 + $0x58] sm:$0xff] %vm1359_vm3, %v1082_v37  ;;  %1144 = vperm.xlu0 %2380, %v1082_v37   ;;  %1124 = vperm.xlu1 %2381, %v1078_v11   ;;  %v1226_v9 = vsub.f32 %v1018_v28, %v1082_v37  ;;  %v3391_v11 = vpop.eup %2382 }
 0x1ee   : > { %v3349_v29 = vmax.f32 %v3339_v15, %v1055_v30  ;;  %v3397_v17 = vpop.eup %2384 }
 0x1ef   : > { %v1253_v51 = vmul.f32 1.442695, %v1226_v9 }
 0x1f0   : > { %1723 = vst.msk [vmem:[#allocation2 + $0x50] sm:$0xff] %vm1359_vm3, %v3349_v29  ;;  %v3402_v21 = vpop.eup %2386 }
 0x1f1   : > { %1119 = vperm.xlu1 %2381, %v3321_v4   ;;  %2396 = vpow2.f32 %v1253_v51  ;;  %v1225_v4 = vsub.f32 %v3339_v15, %v3349_v29 }
 0x1f2   : > { %v1064_v44 = vpop.xlane.xlu1 %1063  ;;  %2398 = vpow2.f32 %v1239_v1 }
 0x1f3   : > { %v1061_v39 = vpop.xlane.xlu0 %1060  ;;  %v1084_v50 = vmax.f32 %v1020_v38, %v1064_v44  ;;  %v1251_v7 = vmul.f32 1.442695, %v1225_v4 }
 0x1f4   : > { %v3359_v40 = vmax.f32 %v3352_v35, %v1061_v39  ;;  %v3409_v24 = vpop.eup %2388 }
 0x1f5   : > { %1726 = vst.msk [vmem:[#allocation2 + $0x68] sm:$0xff] %vm1359_vm3, %v1084_v50  ;;  %1154 = vperm.xlu0 %2380, %v1084_v50   ;;  %1129 = vperm.xlu1 %2381, %v3337_v18   ;;  %v1228_v13 = vsub.f32 %v1020_v38, %v1084_v50  ;;  %v3414_v28 = vpop.eup %2390 }
 0x1f6   : > { %1725 = vst.msk [vmem:[#allocation2 + $0x60] sm:$0xff] %vm1359_vm3, %v3359_v40  ;;  %v1070_v60 = vpop.xlane.xlu1 %1069  ;;  %v1227_v18 = vsub.f32 %v3352_v35, %v3359_v40 }
 0x1f7   : > { %v1067_v54 = vpop.xlane.xlu0 %1066  ;;  %v3376_v2 = vmax.f32 %v3366_v53, %v1070_v60  ;;  %v1257_v49 = vmul.f32 1.442695, %v1228_v13 }
 0x1f8   : > { %v3372_v57 = vmax.f32 %v3361_v46, %v1067_v54  ;;  %v3417_v30 = vpop.eup %2392 }
 0x1f9   : > { %v1230_v6 = vsub.f32 %v3366_v53, %v3376_v2  ;;  %1728 = vst.msk [vmem:[#allocation2 + $0x78] sm:$0xff] %vm1359_vm3, %v3376_v2  ;;  %1164 = vperm.xlu0 %2380, %v3376_v2   ;;  %1139 = vperm.xlu1 %2381, %v3349_v29   ;;  %2400 = vpow2.f32 %v1257_v49  ;;  %v3422_v32 = vpop.eup %2394  ;;  %v1255_v29 = vmul.f32 1.442695, %v1227_v18 }
 0x1fa   : > { %v1229_v3 = vsub.f32 %v3361_v46, %v3372_v57  ;;  %1727 = vst.msk [vmem:[#allocation2 + $0x70] sm:$0xff] %vm1359_vm3, %v3372_v57  ;;  %2402 = vpow2.f32 %v1243_v56 }
 0x1fb   : > { %2404 = vpow2.f32 %v1247_v59  ;;  %v1261_v46 = vmul.f32 1.442695, %v1230_v6 }
 0x1fc   : > { %2406 = vpow2.f32 %v1251_v7 }
 0x1fd   : > { %1394 = vperm.xlu0 %2380, %v3391_v11   ;;  %1149 = vperm.xlu1 %2381, %v3359_v40   ;;  %2408 = vpow2.f32 %v1255_v29 }
 0x1fe   : > { %v3425_v15 = vpop.eup %2396 }
 0x1ff   : > { %v3428_v34 = vpop.eup %2398 }
 0x201   : > { %1409 = vperm.xlu0 %2380, %v3397_v17   ;;  %1159 = vperm.xlu1 %2381, %v3372_v57  }
 0x205   : > { %1419 = vperm.xlu0 %2380, %v3402_v21   ;;  %1399 = vperm.xlu1 %2381, %v3414_v28  }
 0x206   : > { %v3431_v36 = vpop.eup %2400 }
 0x207   : > { %v3434_v35 = vpop.eup %2402 }
 0x208   : > { %v3437_v37 = vpop.eup %2404 }
 0x209   : > { %1429 = vperm.xlu0 %2380, %v3409_v24   ;;  %1404 = vperm.xlu1 %2381, %v3422_v32   ;;  %v3440_v38 = vpop.eup %2406 }
 0x20a   : > { %v3443_v39 = vpop.eup %2408 }
 0x20d   : > { %1439 = vperm.xlu0 %2380, %v3417_v30   ;;  %1414 = vperm.xlu1 %2381, %v3428_v34  }
 0x211   : > { %1449 = vperm.xlu0 %2380, %v3425_v15   ;;  %1424 = vperm.xlu1 %2381, %v3434_v35  }
 0x215   : > { %1459 = vperm.xlu0 %2380, %v3431_v36   ;;  %1434 = vperm.xlu1 %2381, %v3437_v37  }
 0x219   : > { %1444 = vperm.xlu1 %2381, %v3440_v38  }
 0x21d   : > { %1454 = vperm.xlu1 %2381, %v3443_v39  }
 0x250   : > { %v1090_v40 = vpop.permute.xlu0 %1089 }
 0x251   : > { %v1167_v43 = vsub.f32 %v2967_v16, %v1090_v40 }
 0x253   : > { %v1183_v44 = vmul.f32 1.442695, %v1167_v43 }
 0x254   : > { %v1095_v48 = vpop.permute.xlu1 %1094 }
 0x255   : > { %2410 = vpow2.f32 %v1183_v44  ;;  %v1168_v50 = vsub.f32 %v2995_v25, %v1095_v48 }
 0x257   : > { %v1185_v54 = vmul.f32 1.442695, %v1168_v50 }
 0x258   : > { %v1105_v55 = vpop.permute.xlu1 %1104 }
 0x259   : > { %2412 = vpow2.f32 %v1185_v54  ;;  %v1170_v60 = vsub.f32 %v3002_v26, %v1105_v55 }
 0x25b   : > { %v1189_v62 = vmul.f32 1.442695, %v1170_v60 }
 0x25c   : > { %v1100_v63 = vpop.permute.xlu1 %1099 }
 0x25d   : > { %2414 = vpow2.f32 %v1189_v62  ;;  %v1169_v41 = vsub.f32 %v3030_v61, %v1100_v63 }
 0x25f   : > { %v1187_v47 = vmul.f32 1.442695, %v1169_v41 }
 0x260   : > { %v1115_v8 = vpop.permute.xlu1 %1114 }
 0x261   : > { %2416 = vpow2.f32 %v1187_v47  ;;  %v1172_v16 = vsub.f32 %v3058_v42, %v1115_v8 }
 0x262   : > { %v2411_v9 = vpop.eup %2410  ;;  %v1135_v12 = vpop.permute.xlu0 %1134 }
 0x263   : > { %v1193_v45 = vmul.f32 1.442695, %v1172_v16  ;;  %2311 = vmatprep.mubr.msk.f32.mxu1 %vm3800_vm5, %v2411_v9  ;;  %v1295_v25 = vsel %vm3801_vm1, %v2411_v9, 0.0  ;;  %v1176_v42 = vsub.f32 %v3154_v5, %v1135_v12  ;;  %vm3814_vm5 = vmmov %vm3798_vm0 }
 0x264   : > { %v1110_v51 = vpop.permute.xlu1 %1109  ;;  %1296 = vadd.xlane.f32.xlu1 %v1295_v25  ;;  %vm3815_vm1 = vmmov %vm3798_vm0 }
 0x265   : > { %2418 = vpow2.f32 %v1193_v45  ;;  %v1171_v26 = vsub.f32 %v3082_v0, %v1110_v51  ;;  %v1201_v0 = vmul.f32 1.442695, %v1176_v42 }
 0x266   : > { %v2413_v13 = vpop.eup %2412 }
 0x267   : > { %v1191_v61 = vmul.f32 1.442695, %v1171_v26  ;;  %2312 = vmatmul.mubr.msk.f32.vlgmr.msra.gmra.mxu1 %vm3802_vm9, %v2413_v13  ;;  %v1298_v20 = vsel %vm3803_vm15, %v2413_v13, 0.0  ;;  %vm3816_vm9 = vmmov %vm3798_vm0 }
 0x268   : > { %v1145_v1 = vpop.permute.xlu0 %1144  ;;  %v1125_v49 = vpop.permute.xlu1 %1124  ;;  %1299 = vadd.xlane.f32.xlu0 %v1298_v20  ;;  %vm3817_vm15 = vmmov %vm3798_vm0 }
 0x269   : > { %2420 = vpow2.f32 %v1191_v61  ;;  %v1174_v56 = vsub.f32 %v3104_v52, %v1125_v49  ;;  %v1178_v18 = vsub.f32 %v3197_v14, %v1145_v1 }
 0x26a   : > { %v2415_v22 = vpop.eup %2414 }
 0x26b   : > { %v1197_v59 = vmul.f32 1.442695, %v1174_v56  ;;  %v1304_v7 = vsel %vm3804_vm11, %v2415_v22, 0.0  ;;  %v1205_v52 = vmul.f32 1.442695, %v1178_v18  ;;  %vm3818_vm11 = vmmov %vm3798_vm0 }
 0x26c   : > { %v1120_v29 = vpop.permute.xlu1 %1119  ;;  %1305 = vadd.xlane.f32.xlu1 %v1304_v7 }
 0x26d   : > { %2422 = vpow2.f32 %v1197_v59  ;;  %v1173_v40 = vsub.f32 %v3132_v58, %v1120_v29  ;;  %v1259_v29 = vmul.f32 1.442695, %v1229_v3 }
 0x26e   : > { %v2417_v43 = vpop.eup %2416  ;;  %2424 = vpow2.f32 %v1201_v0 }
 0x26f   : > { %v1195_v5 = vmul.f32 1.442695, %v1173_v40  ;;  %2314 = vmatprep.mubr.msk.f32.mxu1 %vm3805_vm12, %v2417_v43  ;;  %v1301_v44 = vsel %vm3806_vm8, %v2417_v43, 0.0  ;;  %vm3819_vm12 = vmmov %vm3798_vm0 }
 0x270   : > { %v1155_v4 = vpop.permute.xlu0 %1154  ;;  %v1130_v50 = vpop.permute.xlu1 %1129  ;;  %1302 = vadd.xlane.f32.xlu0 %v1301_v44  ;;  %2315 = vmatmul.mubr.msk.f32.gmra.mxu1 %vm3807_vm14, %v2415_v22  ;;  %vm3820_vm8 = vmmov %vm3798_vm0 }
 0x271   : > { %v1180_v48 = vsub.f32 %v3236_v23, %v1155_v4  ;;  %2426 = vpow2.f32 %v1195_v5  ;;  %v1175_v54 = vsub.f32 %v3175_v10, %v1130_v50  ;;  %vm3821_vm14 = vmmov %vm3798_vm0 }
 0x272   : > { %v2419_v55 = vpop.eup %2418  ;;  %2428 = vpow2.f32 %v1205_v52 }
 0x273   : > { %v1199_v58 = vmul.f32 1.442695, %v1175_v54  ;;  %v1310_v60 = vsel %vm3808_vm2, %v2419_v55, 0.0  ;;  %v1209_v62 = vmul.f32 1.442695, %v1180_v48  ;;  %vm3822_vm2 = vmmov %vm3798_vm0 }
 0x274   : > { %v1165_v14 = vpop.permute.xlu0 %1164  ;;  %v1140_v41 = vpop.permute.xlu1 %1139  ;;  %1311 = vadd.xlane.f32.xlu1 %v1310_v60 }
 0x275   : > { %v1182_v63 = vsub.f32 %v3257_v31, %v1165_v14  ;;  %2430 = vpow2.f32 %v1199_v58  ;;  %v1177_v23 = vsub.f32 %v3215_v19, %v1140_v41 }
 0x276   : > { %v2421_v47 = vpop.eup %2420  ;;  %2432 = vpow2.f32 %v1209_v62 }
 0x277   : > { %v1203_v8 = vmul.f32 1.442695, %v1177_v23  ;;  %2317 = vmatprep.mubr.msk.f32.mxu1 %vm3809_vm4, %v2421_v47  ;;  %v1307_v16 = vsel %vm3810_vm13, %v2421_v47, 0.0  ;;  %v1213_v10 = vmul.f32 1.442695, %v1182_v63  ;;  %vm3823_vm4 = vmmov %vm3798_vm0  ;;  %v1263_v63 = vld [vmem:[#allocation3] sm:$0xff] }
 0x278   : > { %v1150_v9 = vpop.permute.xlu1 %1149  ;;  %1308 = vadd.xlane.f32.xlu0 %v1307_v16  ;;  %2318 = vmatmul.mubr.msk.f32.gmra.mxu1 %vm3811_vm7, %v2419_v55  ;;  %vm3824_vm13 = vmmov %vm3798_vm0  ;;  %v3508_v52 = vpop.permute.xlu0 %1394  ;;  %v1279_v41 = vmul.f32 %v3391_v11, %v1263_v63  ;;  %v1273_v63 = vld [vmem:[#allocation3 + $0x50] sm:$0xff] }
 0x279   : > { %2434 = vpow2.f32 %v1203_v8  ;;  %v1179_v31 = vsub.f32 %v3249_v27, %v1150_v9  ;;  %vm3825_vm7 = vmmov %vm3798_vm0  ;;  %v1264_v8 = vld [vmem:[#allocation3 + $0x8] sm:$0xff] }
 0x27a   : > { %v2423_v12 = vpop.eup %2422  ;;  %2436 = vpow2.f32 %v1213_v10  ;;  %v1280_v10 = vmul.f32 %v3414_v28, %v1264_v8  ;;  %v1289_v8 = vmul.f32 %v3440_v38, %v1273_v63  ;;  %v1277_v38 = vld [vmem:[#allocation3 + $0x70] sm:$0xff] }
 0x27b   : > { %v1207_v45 = vmul.f32 1.442695, %v1179_v31  ;;  %v1316_v25 = vsel %vm3812_vm10, %v2423_v12, 0.0  ;;  %v2425_v51 = vpop.eup %2424  ;;  %vm3826_vm10 = vmmov %vm3798_vm0  ;;  %v1266_v31 = vld [vmem:[#allocation3 + $0x18] sm:$0xff] }
 0x27c   : > { %v1160_v19 = vpop.permute.xlu1 %1159  ;;  %1317 = vadd.xlane.f32.xlu1 %v1316_v25  ;;  %v1322_v27 = vsel %vm3815_vm1, %v2425_v51, 0.0  ;;  %vm3829_vm1 = vmmov %vm3798_vm0  ;;  %v3512_v50 = vpop.permute.xlu0 %1409 }
 0x27d   : > { %2438 = vpow2.f32 %v1207_v45  ;;  %v1181_v26 = vsub.f32 %v3259_v33, %v1160_v19  ;;  %v1282_v45 = vmul.f32 %v3397_v17, %v1266_v31  ;;  %v1265_v19 = vld [vmem:[#allocation3 + $0x10] sm:$0xff] }
 0x27e   : > { %v2427_v13 = vpop.eup %2426  ;;  %v1281_v11 = vmul.f32 %v3422_v32, %v1265_v19 }
 0x27f   : > { %v1211_v1 = vmul.f32 1.442695, %v1181_v26  ;;  %2320 = vmatprep.mubr.msk.f32.mxu1 %vm3798_vm0, %v2427_v13  ;;  %v1313_v61 = vsel %vm3813_vm6, %v2427_v13, 0.0  ;;  %v2429_v20 = vpop.eup %2428  ;;  %vm3827_vm6 = vmmov %vm3798_vm0  ;;  %v1268_v13 = vld [vmem:[#allocation3 + $0x28] sm:$0xff] }
 0x280   : > { %1314 = vadd.xlane.f32.xlu0 %v1313_v61  ;;  %2321 = vmatmul.mubr.msk.f32.gmra.mxu1 %vm3814_vm5, %v2423_v12  ;;  %v1328_v33 = vsel %vm3819_vm12, %v2429_v20, 0.0  ;;  %vm3828_vm5 = vmmov %vm3798_vm0  ;;  %v3506_v44 = vpop.permute.xlu1 %1399  ;;  %v3516_v53 = vpop.permute.xlu0 %1419  ;;  %v1284_v28 = vmul.f32 %v3402_v21, %v1268_v13 }
 0x281   : > { %2440 = vpow2.f32 %v1211_v1  ;;  %1323 = vadd.xlane.f32.xlu1 %v1322_v27  ;;  %v1267_v27 = vld [vmem:[#allocation3 + $0x20] sm:$0xff]  ;;  %vm3834_vm12 = vmmov %vm3798_vm0 }
 0x282   : > { %v2431_v42 = vpop.eup %2430  ;;  %2442 = vpow2.f32 %v1259_v29  ;;  %v1283_v17 = vmul.f32 %v3428_v34, %v1267_v27 }
 0x283   : > { %2323 = vmatprep.mubr.msk.f32.mxu1 %vm3816_vm9, %v2431_v42  ;;  %v1319_v49 = vsel %vm3817_vm15, %v2431_v42, 0.0  ;;  %v2433_v56 = vpop.eup %2432  ;;  %2444 = vpow2.f32 %v1261_v46  ;;  %vm3830_vm9 = vmmov %vm3798_vm0 }
 0x284   : > { %1320 = vadd.xlane.f32.xlu0 %v1319_v49  ;;  %2324 = vmatmul.mubr.msk.f32.gmra.mxu1 %vm3818_vm11, %v2425_v51  ;;  %v1334_v4 = vsel %vm3823_vm4, %v2433_v56, 0.0  ;;  %v3510_v48 = vpop.permute.xlu1 %1404  ;;  %v3520_v6 = vpop.permute.xlu0 %1429  ;;  %v1270_v49 = vld [vmem:[#allocation3 + $0x38] sm:$0xff]  ;;  %vm3831_vm15 = vmmov %vm3798_vm0 }
 0x285   : > { %1329 = vadd.xlane.f32.xlu1 %v1328_v33  ;;  %v1286_v32 = vmul.f32 %v3409_v24, %v1270_v49  ;;  %v1379_v49 = vld [vmem:[#allocation4 + $0x18] sm:$0xff]  ;;  %vm3833_vm11 = vmmov %vm3798_vm0 }
 0x286   : > { %v2435_v22 = vpop.eup %2434  ;;  %vm3838_vm4 = vmmov %vm3798_vm0 }
 0x287   : > { %2326 = vmatprep.mubr.msk.f32.mxu1 %vm3820_vm8, %v2435_v22  ;;  %v1325_v59 = vsel %vm3821_vm14, %v2435_v22, 0.0  ;;  %v2437_v7 = vpop.eup %2436  ;;  %v1269_v22 = vld [vmem:[#allocation3 + $0x30] sm:$0xff]  ;;  %vm3835_vm8 = vmmov %vm3798_vm0 }
 0x288   : > { %1326 = vadd.xlane.f32.xlu0 %v1325_v59  ;;  %2327 = vmatmul.mubr.msk.f32.gmra.mxu1 %vm3822_vm2, %v2429_v20  ;;  %v1340_v40 = vsel %vm3798_vm0, %v2437_v7, 0.0  ;;  %v3514_v14 = vpop.permute.xlu1 %1414  ;;  %v3524_v55 = vpop.permute.xlu0 %1439  ;;  %v1285_v21 = vmul.f32 %v3434_v35, %v1269_v22  ;;  %vm3836_vm14 = vmmov %vm3798_vm0 }
 0x289   : > { %1335 = vadd.xlane.f32.xlu1 %v1334_v4  ;;  %v1272_v4 = vld [vmem:[#allocation3 + $0x48] sm:$0xff]  ;;  %vm3837_vm2 = vmmov %vm3798_vm0 }
 0x28a   : > { %v2439_v0 = vpop.eup %2438 }
 0x28b   : > { %2329 = vmatprep.mubr.msk.f32.mxu1 %vm3824_vm13, %v2439_v0  ;;  %v1331_v18 = vsel %vm3825_vm7, %v2439_v0, 0.0  ;;  %vm3839_vm13 = vmmov %vm3798_vm0 }
 0x28c   : > { %1332 = vadd.xlane.f32.xlu0 %v1331_v18  ;;  %2330 = vmatmul.mubr.msk.f32.gmra.mxu1 %vm3826_vm10, %v2433_v56  ;;  %v3518_v2 = vpop.permute.xlu1 %1424  ;;  %v3528_v60 = vpop.permute.xlu0 %1449  ;;  %v1271_v18 = vld [vmem:[#allocation3 + $0x40] sm:$0xff]  ;;  %vm3840_vm7 = vmmov %vm3798_vm0 }
 0x28d   : > { %1341 = vadd.xlane.f32.xlu1 %v1340_v40  ;;  %v1274_v40 = vld [vmem:[#allocation3 + $0x58] sm:$0xff]  ;;  %v1287_v24 = vmul.f32 %v3437_v37, %v1271_v18  ;;  %v1275_v37 = vld [vmem:[#allocation3 + $0x60] sm:$0xff]  ;;  %vm3841_vm10 = vmmov %vm3798_vm0 }
 0x28e   : > { %v2441_v43 = vpop.eup %2440 }
 0x28f   : > { %2332 = vmatprep.mubr.msk.f32.mxu1 %vm3827_vm6, %v2441_v43  ;;  %v1337_v5 = vsel %vm3828_vm5, %v2441_v43, 0.0  ;;  %v3500_v57 = vpop.eup %2442  ;;  %vm3842_vm6 = vmmov %vm3798_vm0 }
 0x290   : > { %1338 = vadd.xlane.f32.xlu0 %v1337_v5  ;;  %2333 = vmatmul.mubr.msk.f32.gmra.mxu1 %vm3829_vm1, %v2437_v7  ;;  %v3503_v3 = vpop.eup %2444  ;;  %v3522_v54 = vpop.permute.xlu1 %1434  ;;  %v1288_v7 = vmul.f32 %v3417_v30, %v1272_v4  ;;  %v1290_v5 = vmul.f32 %v3425_v15, %v1274_v40  ;;  %v1380_v4 = vld [vmem:[#allocation4 + $0x20] sm:$0xff]  ;;  %vm3843_vm5 = vmmov %vm3798_vm0 }
 0x291   : > { %v3533_v23 = vpop.permute.xlu0 %1459  ;;  %vm3844_vm1 = vmmov %vm3798_vm0 }
 0x294   : > { %v3526_v58 = vpop.permute.xlu1 %1444 }
 0x298   : > { %v3530_v62 = vpop.permute.xlu1 %1454 }
 0x29e   : > { %1464 = vperm.xlu1 %2381, %v3500_v57  }
 0x2a6   : > { %1469 = vperm.xlu0 %2380, %v3503_v3  }
 0x2ed   : > { %v1297_v47 = vpop.xlane.xlu1 %1296 }
 0x2ee   : > { %v1343_v16 = vadd.f32 %v1297_v47, %v1279_v41  ;;  %v1276_v47 = vld [vmem:[#allocation3 + $0x68] sm:$0xff] }
 0x2f0   : > { %1360 = vst.msk [vmem:[#allocation3] sm:$0xff] %vm1359_vm3, %v1343_v16  ;;  %v1292_v16 = vmul.f32 %v3431_v36, %v1276_v47  ;;  %v1293_v36 = vmul.f32 %v3500_v57, %v1277_v38  ;;  %v1378_v57 = vld [vmem:[#allocation4 + $0x10] sm:$0xff] }
 0x2f1   : > { %v1300_v9 = vpop.xlane.xlu0 %1299 }
 0x2f2   : > { %v1344_v12 = vadd.f32 %v1300_v9, %v1280_v10 }
 0x2f4   : > { %1361 = vst.msk [vmem:[#allocation3 + $0x8] sm:$0xff] %vm1359_vm3, %v1344_v12  ;;  %v1278_v12 = vld [vmem:[#allocation3 + $0x78] sm:$0xff] }
 0x2f5   : > { %v1306_v25 = vpop.xlane.xlu1 %1305 }
 0x2f6   : > { %v1346_v51 = vadd.f32 %v1306_v25, %v1282_v45  ;;  %v1291_v45 = vmul.f32 %v3443_v39, %v1275_v37  ;;  %v1294_v25 = vmul.f32 %v3503_v3, %v1278_v12  ;;  %v1377_v39 = vld [vmem:[#allocation4 + $0x8] sm:$0xff]  ;;  %v1388_v12 = vld [vmem:[#allocation4 + $0x60] sm:$0xff] }
 0x2f7   : > { %v1389_v37 = vld [vmem:[#allocation4 + $0x68] sm:$0xff]  ;;  %v1484_v38 = vmul.f32 %v3530_v62, %v1388_v12 }
 0x2f8   : > { %1363 = vst.msk [vmem:[#allocation3 + $0x18] sm:$0xff] %vm1359_vm3, %v1346_v51 }
 0x2f9   : > { %v1303_v26 = vpop.xlane.xlu0 %1302 }
 0x2fa   : > { %v1345_v1 = vadd.f32 %v1303_v26, %v1281_v11 }
 0x2fc   : > { %1362 = vst.msk [vmem:[#allocation3 + $0x10] sm:$0xff] %vm1359_vm3, %v1345_v1 }
 0x2fd   : > { %v1312_v61 = vpop.xlane.xlu1 %1311 }
 0x2fe   : > { %v1348_v20 = vadd.f32 %v1312_v61, %v1284_v28  ;;  %v1376_v28 = vld [vmem:[#allocation4] sm:$0xff]  ;;  %v1473_v61 = vmul.f32 %v3506_v44, %v1377_v39 }
 0x2ff   : > { %v1472_v27 = vmul.f32 %v3508_v52, %v1376_v28  ;;  %v1381_v52 = vld [vmem:[#allocation4 + $0x28] sm:$0xff] }
 0x300   : > { %1365 = vst.msk [vmem:[#allocation3 + $0x28] sm:$0xff] %vm1359_vm3, %v1348_v20 }
 0x301   : > { %v1309_v42 = vpop.xlane.xlu0 %1308 }
 0x302   : > { %v1347_v33 = vadd.f32 %v1309_v42, %v1283_v17 }
 0x304   : > { %1364 = vst.msk [vmem:[#allocation3 + $0x20] sm:$0xff] %vm1359_vm3, %v1347_v33  ;;  %v1475_v33 = vmul.f32 %v3512_v50, %v1379_v49 }
 0x305   : > { %v1318_v56 = vpop.xlane.xlu1 %1317 }
 0x306   : > { %v1350_v59 = vadd.f32 %v1318_v56, %v1286_v32  ;;  %v1474_v56 = vmul.f32 %v3510_v48, %v1378_v57  ;;  %v1383_v48 = vld [vmem:[#allocation4 + $0x38] sm:$0xff] }
 0x307   : > { %v1479_v40 = vmul.f32 %v3520_v6, %v1383_v48  ;;  %v1386_v6 = vld [vmem:[#allocation4 + $0x50] sm:$0xff] }
 0x308   : > { %1367 = vst.msk [vmem:[#allocation3 + $0x38] sm:$0xff] %vm1359_vm3, %v1350_v59 }
 0x309   : > { %v1315_v0 = vpop.xlane.xlu0 %1314 }
 0x30a   : > { %v1324_v34 = vpop.xlane.xlu1 %1323  ;;  %v1349_v29 = vadd.f32 %v1315_v0, %v1285_v21  ;;  %v1477_v21 = vmul.f32 %v3516_v53, %v1381_v52  ;;  %v1476_v0 = vmul.f32 %v3514_v14, %v1380_v4  ;;  %v1384_v53 = vld [vmem:[#allocation4 + $0x40] sm:$0xff] }
 0x30b   : > { %v1352_v43 = vadd.f32 %v1324_v34, %v1288_v7 }
 0x30c   : > { %1366 = vst.msk [vmem:[#allocation3 + $0x30] sm:$0xff] %vm1359_vm3, %v1349_v29  ;;  %v1382_v29 = vld [vmem:[#allocation4 + $0x30] sm:$0xff] }
 0x30d   : > { %1369 = vst.msk [vmem:[#allocation3 + $0x48] sm:$0xff] %vm1359_vm3, %v1352_v43  ;;  %v1321_v46 = vpop.xlane.xlu0 %1320  ;;  %v1385_v43 = vld [vmem:[#allocation4 + $0x48] sm:$0xff] }
 0x30e   : > { %v1330_v41 = vpop.xlane.xlu1 %1329  ;;  %v1351_v35 = vadd.f32 %v1321_v46, %v1287_v24  ;;  %v1481_v14 = vmul.f32 %v3524_v55, %v1385_v43  ;;  %v1482_v55 = vmul.f32 %v3526_v58, %v1386_v6 }
 0x30f   : > { %v1354_v30 = vadd.f32 %v1330_v41, %v1290_v5  ;;  %v1478_v5 = vmul.f32 %v3518_v2, %v1382_v29 }
 0x310   : > { %1368 = vst.msk [vmem:[#allocation3 + $0x40] sm:$0xff] %vm1359_vm3, %v1351_v35  ;;  %v1387_v35 = vld [vmem:[#allocation4 + $0x58] sm:$0xff] }
 0x311   : > { %1371 = vst.msk [vmem:[#allocation3 + $0x58] sm:$0xff] %vm1359_vm3, %v1354_v30  ;;  %v1327_v10 = vpop.xlane.xlu0 %1326  ;;  %v1480_v30 = vmul.f32 %v3522_v54, %v1384_v53  ;;  %v1485_v54 = vmul.f32 %v3533_v23, %v1389_v37 }
 0x312   : > { %v1336_v9 = vpop.xlane.xlu1 %1335  ;;  %v1353_v31 = vadd.f32 %v1327_v10, %v1289_v8  ;;  %v1483_v10 = vmul.f32 %v3528_v60, %v1387_v35 }
 0x313   : > { %v1356_v15 = vadd.f32 %v1336_v9, %v1292_v16 }
 0x314   : > { %1370 = vst.msk [vmem:[#allocation3 + $0x50] sm:$0xff] %vm1359_vm3, %v1353_v31 }
 0x315   : > { %1373 = vst.msk [vmem:[#allocation3 + $0x68] sm:$0xff] %vm1359_vm3, %v1356_v15  ;;  %v1333_v19 = vpop.xlane.xlu0 %1332 }
 0x316   : > { %v1342_v51 = vpop.xlane.xlu1 %1341  ;;  %v1355_v11 = vadd.f32 %v1333_v19, %v1291_v45 }
 0x317   : > { %v1358_v26 = vadd.f32 %v1342_v51, %v1294_v25  ;;  %v1391_v25 = vld [vmem:[#allocation4 + $0x78] sm:$0xff] }
 0x318   : > { %1372 = vst.msk [vmem:[#allocation3 + $0x60] sm:$0xff] %vm1359_vm3, %v1355_v11  ;;  %v1390_v11 = vld [vmem:[#allocation4 + $0x70] sm:$0xff] }
 0x319   : > { %1375 = vst.msk [vmem:[#allocation3 + $0x78] sm:$0xff] %vm1359_vm3, %v1358_v26  ;;  %v1339_v13 = vpop.xlane.xlu0 %1338 }
 0x31a   : > { %v1357_v1 = vadd.f32 %v1339_v13, %v1293_v36  ;;  %v1465_v58 = vpop.permute.xlu1 %1464 }
 0x31b   : > { %v1486_v23 = vmul.f32 %v1465_v58, %v1390_v11 }
 0x31c   : > { %1374 = vst.msk [vmem:[#allocation3 + $0x70] sm:$0xff] %vm1359_vm3, %v1357_v1  ;;  %vm3832_vm3 = vmmov %vm3798_vm0 }
 0x321   : > { %v1470_v19 = vpop.permute.xlu0 %1469 }
 0x322   : > { %v1487_v36 = vmul.f32 %v1470_v19, %v1391_v25 }
 0x327   : > { %v2313_v3 = vpop.f32.mrf.mxu1 }
 0x328   : > { %v1682_v20 = vadd.f32 %v2313_v3, %v1473_v61 }
 0x329   : > { %v1602_v17 = vpop.f32.mrf.mxu1 }
 0x32a   : > { %1698 = vst.msk [vmem:[#allocation4 + $0x8] sm:$0xff] %vm3830_vm9, %v1682_v20  ;;  %v1681_v42 = vadd.f32 %v1602_v17, %v1472_v27 }
 0x32c   : > { %1697 = vst.msk [vmem:[#allocation4] sm:$0xff] %vm3831_vm15, %v1681_v42 }
 0x330   : > { %v2316_v32 = vpop.f32.mrf.mxu1 }
 0x331   : > { %v1684_v22 = vadd.f32 %v2316_v32, %v1475_v33 }
 0x332   : > { %v1612_v59 = vpop.f32.mrf.mxu1 }
 0x333   : > { %1700 = vst.msk [vmem:[#allocation4 + $0x18] sm:$0xff] %vm3832_vm3, %v1684_v22  ;;  %v1683_v44 = vadd.f32 %v1612_v59, %v1474_v56 }
 0x335   : > { %1699 = vst.msk [vmem:[#allocation4 + $0x10] sm:$0xff] %vm3833_vm11, %v1683_v44 }
 0x338   : > { %v2319_v7 = vpop.f32.mrf.mxu1 }
 0x339   : > { %v1686_v18 = vadd.f32 %v2319_v7, %v1477_v21 }
 0x33a   : > { %v1622_v34 = vpop.f32.mrf.mxu1 }
 0x33b   : > { %1702 = vst.msk [vmem:[#allocation4 + $0x28] sm:$0xff] %vm3834_vm12, %v1686_v18  ;;  %v1685_v50 = vadd.f32 %v1622_v34, %v1476_v0 }
 0x33d   : > { %1701 = vst.msk [vmem:[#allocation4 + $0x20] sm:$0xff] %vm3835_vm8, %v1685_v50 }
 0x340   : > { %v2322_v24 = vpop.f32.mrf.mxu1 }
 0x341   : > { %v1688_v46 = vadd.f32 %v2322_v24, %v1479_v40 }
 0x342   : > { %v1632_v63 = vpop.f32.mrf.mxu1 }
 0x343   : > { %1704 = vst.msk [vmem:[#allocation4 + $0x38] sm:$0xff] %vm3836_vm14, %v1688_v46  ;;  %v1687_v41 = vadd.f32 %v1632_v63, %v1478_v5 }
 0x344   : > { %v2325_v47 = vpop.f32.mrf.mxu1 }
 0x345   : > { %1703 = vst.msk [vmem:[#allocation4 + $0x30] sm:$0xff] %vm3837_vm2, %v1687_v41  ;;  %v1690_v8 = vadd.f32 %v2325_v47, %v1481_v14 }
 0x346   : > { %v1642_v16 = vpop.f32.mrf.mxu1 }
 0x347   : > { %1706 = vst.msk [vmem:[#allocation4 + $0x48] sm:$0xff] %vm3838_vm4, %v1690_v8  ;;  %v1689_v2 = vadd.f32 %v1642_v16, %v1480_v30 }
 0x348   : > { %v2328_v9 = vpop.f32.mrf.mxu1 }
 0x349   : > { %1705 = vst.msk [vmem:[#allocation4 + $0x40] sm:$0xff] %vm3839_vm13, %v1689_v2  ;;  %v1692_v31 = vadd.f32 %v2328_v9, %v1483_v10 }
 0x34a   : > { %v1652_v15 = vpop.f32.mrf.mxu1 }
 0x34b   : > { %1708 = vst.msk [vmem:[#allocation4 + $0x58] sm:$0xff] %vm3840_vm7, %v1692_v31  ;;  %v1691_v45 = vadd.f32 %v1652_v15, %v1482_v55 }
 0x34c   : > { %v2331_v60 = vpop.f32.mrf.mxu1 }
 0x34d   : > { %1707 = vst.msk [vmem:[#allocation4 + $0x50] sm:$0xff] %vm3841_vm10, %v1691_v45  ;;  %v1694_v51 = vadd.f32 %v2331_v60, %v1485_v54 }
 0x34e   : > { %v1662_v26 = vpop.f32.mrf.mxu1 }
 0x34f   : > { %1710 = vst.msk [vmem:[#allocation4 + $0x68] sm:$0xff] %vm3798_vm0, %v1694_v51  ;;  %v1693_v13 = vadd.f32 %v1662_v26, %v1484_v38 }
 0x350   : > { %v2334_v1 = vpop.f32.mrf.mxu1 }
 0x351   : > { %1709 = vst.msk [vmem:[#allocation4 + $0x60] sm:$0xff] %vm3842_vm6, %v1693_v13  ;;  %v1696_v39 = vadd.f32 %v2334_v1, %v1487_v36  ;;  %1731 = sbr.rel (%p2182_p4) target bundleno = 1027 (0x403), region = 40 }
 0x352   : > { %v1672_v28 = vpop.f32.mrf.mxu1 }
 0x353   : > { %1712 = vst.msk [vmem:[#allocation4 + $0x78] sm:$0xff] %vm3843_vm5, %v1696_v39  ;;  %v1695_v61 = vadd.f32 %v1672_v28, %v1486_v23 }
 0x355   : > { %1711 = vst.msk [vmem:[#allocation4 + $0x70] sm:$0xff] %vm3844_vm1, %v1695_v61 }
 0x356   : > { %v1734_v62 = vld [vmem:[#allocation3 + $0x10] sm:$0xff]  ;;  %v1732_v3 = vld [vmem:[#allocation3] sm:$0xff]  ;;  %v1735_v27 = vld [vmem:[#allocation3 + $0x18] sm:$0xff]  ;;  %v2538_v20 = vmov 0   ;;  %vm3845_vm9 = vcmask 523264  }
 0x357   : > { %2447 = vset.pattern.permute.xlu1 %v2538_v20  ;;  %2446 = vset.pattern.permute.xlu0 %v2538_v20  ;;  %v1750_v17 = vmax.f32 %v1734_v62, 1e-30  ;;  %v1748_v42 = vmax.f32 %v1732_v3, 1e-30  ;;  %v1751_v49 = vmax.f32 %v1735_v27, 1e-30  ;;  %vm3846_vm15 = vmmov %vm3845_vm9 }
 0x358   : > { %v1733_v57 = vld [vmem:[#allocation3 + $0x8] sm:$0xff]  ;;  %v1736_v56 = vld [vmem:[#allocation3 + $0x20] sm:$0xff]  ;;  %v1739_v44 = vld [vmem:[#allocation3 + $0x38] sm:$0xff] }
 0x359   : > { %v1737_v33 = vld [vmem:[#allocation3 + $0x28] sm:$0xff]  ;;  %2448 = vrcp.f32 %v1750_v17  ;;  %v1749_v32 = vmax.f32 %v1733_v57, 1e-30  ;;  %v1752_v59 = vmax.f32 %v1736_v56, 1e-30  ;;  %v1738_v52 = vld [vmem:[#allocation3 + $0x30] sm:$0xff]  ;;  %vm3847_vm3 = vmmov %vm3845_vm9 }
 0x35a   : > { %2450 = vrcp.f32 %v1748_v42  ;;  %v1753_v22 = vmax.f32 %v1737_v33, 1e-30  ;;  %v1755_v4 = vmax.f32 %v1739_v44, 1e-30  ;;  %v1754_v21 = vmax.f32 %v1738_v52, 1e-30  ;;  %vm3848_vm11 = vmmov %vm3847_vm3 }
 0x35b   : > { %2452 = vrcp.f32 %v1751_v49  ;;  %v1741_v7 = vld [vmem:[#allocation3 + $0x48] sm:$0xff]  ;;  %v1740_v0 = vld [vmem:[#allocation3 + $0x40] sm:$0xff]  ;;  %v1743_v50 = vld [vmem:[#allocation3 + $0x58] sm:$0xff] }
 0x35c   : > { %2454 = vrcp.f32 %v1749_v32  ;;  %v1757_v18 = vmax.f32 %v1741_v7, 1e-30  ;;  %v1756_v34 = vmax.f32 %v1740_v0, 1e-30  ;;  %v1742_v48 = vld [vmem:[#allocation3 + $0x50] sm:$0xff]  ;;  %v1745_v46 = vld [vmem:[#allocation3 + $0x68] sm:$0xff]  ;;  %vm3849_vm12 = vmmov %vm3847_vm3 }
 0x35d   : > { %2456 = vrcp.f32 %v1753_v22  ;;  %v1759_v43 = vmax.f32 %v1743_v50, 1e-30  ;;  %v1758_v5 = vmax.f32 %v1742_v48, 1e-30  ;;  %v1744_v63 = vld [vmem:[#allocation3 + $0x60] sm:$0xff]  ;;  %v1747_v47 = vld [vmem:[#allocation3 + $0x78] sm:$0xff]  ;;  %vm3850_vm8 = vmmov %vm3847_vm3 }
 0x35e   : > { %2458 = vrcp.f32 %v1752_v59  ;;  %v1761_v14 = vmax.f32 %v1745_v46, 1e-30  ;;  %v1760_v35 = vmax.f32 %v1744_v63, 1e-30  ;;  %v1746_v8 = vld [vmem:[#allocation3 + $0x70] sm:$0xff]  ;;  %v1796_v19 = vld [vmem:[#allocation4] sm:$0xff]  ;;  %vm3851_vm14 = vmmov %vm3847_vm3 }
 0x35f   : > { %2460 = vrcp.f32 %v1755_v4  ;;  %v1763_v6 = vmax.f32 %v1747_v47, 1e-30  ;;  %v1762_v10 = vmax.f32 %v1746_v8, 1e-30  ;;  %v1798_v25 = vld [vmem:[#allocation4 + $0x10] sm:$0xff]  ;;  %v1799_v58 = vld [vmem:[#allocation4 + $0x18] sm:$0xff]  ;;  %vm3852_vm2 = vmmov %vm3847_vm3 }
 0x360   : > { %2462 = vrcp.f32 %v1754_v21  ;;  %v1797_v26 = vld [vmem:[#allocation4 + $0x8] sm:$0xff]  ;;  %v1800_v28 = vld [vmem:[#allocation4 + $0x20] sm:$0xff]  ;;  %v1803_v20 = vld [vmem:[#allocation4 + $0x38] sm:$0xff] }
 0x361   : > { %2464 = vrcp.f32 %v1757_v18  ;;  %v1801_v39 = vld [vmem:[#allocation4 + $0x28] sm:$0xff]  ;;  %v1802_v17 = vld [vmem:[#allocation4 + $0x30] sm:$0xff]  ;;  %v1804_v56 = vld [vmem:[#allocation4 + $0x40] sm:$0xff] }
 0x362   : > { %2466 = vrcp.f32 %v1756_v34  ;;  %v1805_v32 = vld [vmem:[#allocation4 + $0x48] sm:$0xff]  ;;  %v1807_v4 = vld [vmem:[#allocation4 + $0x58] sm:$0xff]  ;;  %vm3853_vm4 = vmmov %vm3852_vm2 }
 0x363   : > { %2468 = vrcp.f32 %v1759_v43  ;;  %v1806_v21 = vld [vmem:[#allocation4 + $0x50] sm:$0xff]  ;;  %vm3854_vm13 = vmmov %vm3852_vm2  ;;  %v1809_v50 = vld [vmem:[#allocation4 + $0x68] sm:$0xff] }
 0x364   : > { %2470 = vrcp.f32 %v1758_v5  ;;  %vm3855_vm7 = vmmov %vm3852_vm2  ;;  %v1808_v48 = vld [vmem:[#allocation4 + $0x60] sm:$0xff]  ;;  %v1811_v5 = vld [vmem:[#allocation4 + $0x78] sm:$0xff] }
 0x365   : > { %2472 = vrcp.f32 %v1761_v14  ;;  %vm3856_vm10 = vmmov %vm3852_vm2  ;;  %v1810_v46 = vld [vmem:[#allocation4 + $0x70] sm:$0xff] }
 0x366   : > { %v2449_v29 = vpop.eup %2448  ;;  %2474 = vrcp.f32 %v1760_v35  ;;  %vm3857_vm0 = vmmov %vm3852_vm2 }
 0x367   : > { %v2451_v40 = vpop.eup %2450  ;;  %1824 = vperm.xlu1 %2447, %v2449_v29   ;;  %2476 = vrcp.f32 %v1763_v6  ;;  %vm3858_vm6 = vmmov %vm3857_vm0 }
 0x368   : > { %v2453_v24 = vpop.eup %2452  ;;  %1814 = vperm.xlu0 %2446, %v2451_v40   ;;  %2478 = vrcp.f32 %v1762_v10  ;;  %vm3859_vm5 = vmmov %vm3857_vm0 }
 0x369   : > { %v2455_v53 = vpop.eup %2454  ;;  %vm3860_vm1 = vmmov %vm3857_vm0 }
 0x36a   : > { %v2457_v41 = vpop.eup %2456 }
 0x36b   : > { %1829 = vperm.xlu1 %2447, %v2453_v24   ;;  %v2459_v30 = vpop.eup %2458 }
 0x36c   : > { %1819 = vperm.xlu0 %2446, %v2455_v53   ;;  %v2461_v16 = vpop.eup %2460 }
 0x36d   : > { %v2463_v2 = vpop.eup %2462 }
 0x36e   : > { %v2465_v37 = vpop.eup %2464 }
 0x36f   : > { %1839 = vperm.xlu1 %2447, %v2457_v41   ;;  %v2467_v9 = vpop.eup %2466 }
 0x370   : > { %1834 = vperm.xlu0 %2446, %v2459_v30   ;;  %v2469_v55 = vpop.eup %2468 }
 0x371   : > { %v2471_v31 = vpop.eup %2470 }
 0x372   : > { %v2473_v12 = vpop.eup %2472 }
 0x373   : > { %1849 = vperm.xlu1 %2447, %v2461_v16   ;;  %v2475_v15 = vpop.eup %2474 }
 0x374   : > { %1844 = vperm.xlu0 %2446, %v2463_v2   ;;  %v2477_v54 = vpop.eup %2476 }
 0x375   : > { %v2479_v45 = vpop.eup %2478 }
 0x377   : > { %1859 = vperm.xlu1 %2447, %v2465_v37  }
 0x378   : > { %1854 = vperm.xlu0 %2446, %v2467_v9  }
 0x37b   : > { %1869 = vperm.xlu1 %2447, %v2469_v55  }
 0x37c   : > { %1864 = vperm.xlu0 %2446, %v2471_v31  }
 0x37f   : > { %1879 = vperm.xlu1 %2447, %v2473_v12  }
 0x380   : > { %1874 = vperm.xlu0 %2446, %v2475_v15  }
 0x383   : > { %1889 = vperm.xlu1 %2447, %v2477_v54  }
 0x384   : > { %1884 = vperm.xlu0 %2446, %v2479_v45  }
 0x3e2   : > { %v1825_v60 = vpop.permute.xlu1 %1824 }
 0x3e3   : > { %v1894_v38 = vmul.f32 %v1825_v60, %v1798_v25  ;;  %v1815_v51 = vpop.permute.xlu0 %1814 }
 0x3e4   : > { %v1892_v11 = vmul.f32 %v1815_v51, %v1796_v19 }
 0x3e5   : > { %1910 = vst.msk [vmem:[%s2656_s24 + $0x10] sm:$0xff] %vm3845_vm9, %v1894_v38 }
 0x3e6   : > { %1908 = vst.msk [vmem:[%s2656_s24] sm:$0xff] %vm3846_vm15, %v1892_v11  ;;  %v1830_v36 = vpop.permute.xlu1 %1829 }
 0x3e7   : > { %v1895_v13 = vmul.f32 %v1830_v36, %v1799_v58  ;;  %v1820_v1 = vpop.permute.xlu0 %1819 }
 0x3e8   : > { %v1893_v23 = vmul.f32 %v1820_v1, %v1797_v26 }
 0x3e9   : > { %1911 = vst.msk [vmem:[%s2656_s24 + $0x18] sm:$0xff] %vm3847_vm3, %v1895_v13 }
 0x3ea   : > { %1909 = vst.msk [vmem:[%s2656_s24 + $0x8] sm:$0xff] %vm3848_vm11, %v1893_v23  ;;  %v1840_v61 = vpop.permute.xlu1 %1839 }
 0x3eb   : > { %v1897_v62 = vmul.f32 %v1840_v61, %v1801_v39  ;;  %v1835_v3 = vpop.permute.xlu0 %1834 }
 0x3ec   : > { %v1896_v27 = vmul.f32 %v1835_v3, %v1800_v28 }
 0x3ed   : > { %1913 = vst.msk [vmem:[%s2656_s24 + $0x28] sm:$0xff] %vm3849_vm12, %v1897_v62 }
 0x3ee   : > { %1912 = vst.msk [vmem:[%s2656_s24 + $0x20] sm:$0xff] %vm3850_vm8, %v1896_v27  ;;  %v1850_v42 = vpop.permute.xlu1 %1849 }
 0x3ef   : > { %v1899_v49 = vmul.f32 %v1850_v42, %v1803_v20  ;;  %v1845_v57 = vpop.permute.xlu0 %1844 }
 0x3f0   : > { %v1898_v33 = vmul.f32 %v1845_v57, %v1802_v17 }
 0x3f1   : > { %1915 = vst.msk [vmem:[%s2656_s24 + $0x38] sm:$0xff] %vm3851_vm14, %v1899_v49 }
 0x3f2   : > { %1914 = vst.msk [vmem:[%s2656_s24 + $0x30] sm:$0xff] %vm3852_vm2, %v1898_v33  ;;  %v1860_v22 = vpop.permute.xlu1 %1859 }
 0x3f3   : > { %v1901_v59 = vmul.f32 %v1860_v22, %v1805_v32  ;;  %v1855_v44 = vpop.permute.xlu0 %1854 }
 0x3f4   : > { %v1900_v52 = vmul.f32 %v1855_v44, %v1804_v56 }
 0x3f5   : > { %1917 = vst.msk [vmem:[%s2656_s24 + $0x48] sm:$0xff] %vm3853_vm4, %v1901_v59 }
 0x3f6   : > { %1916 = vst.msk [vmem:[%s2656_s24 + $0x40] sm:$0xff] %vm3854_vm13, %v1900_v52  ;;  %v1870_v7 = vpop.permute.xlu1 %1869 }
 0x3f7   : > { %v1903_v0 = vmul.f32 %v1870_v7, %v1807_v4  ;;  %v1865_v18 = vpop.permute.xlu0 %1864 }
 0x3f8   : > { %v1902_v34 = vmul.f32 %v1865_v18, %v1806_v21 }
 0x3f9   : > { %1919 = vst.msk [vmem:[%s2656_s24 + $0x58] sm:$0xff] %vm3855_vm7, %v1903_v0 }
 0x3fa   : > { %1918 = vst.msk [vmem:[%s2656_s24 + $0x50] sm:$0xff] %vm3856_vm10, %v1902_v34  ;;  %v1880_v29 = vpop.permute.xlu1 %1879 }
 0x3fb   : > { %v1905_v40 = vmul.f32 %v1880_v29, %v1809_v50  ;;  %v1875_v43 = vpop.permute.xlu0 %1874 }
 0x3fc   : > { %v1904_v24 = vmul.f32 %v1875_v43, %v1808_v48 }
 0x3fd   : > { %1921 = vst.msk [vmem:[%s2656_s24 + $0x68] sm:$0xff] %vm3857_vm0, %v1905_v40 }
 0x3fe   : > { %1920 = vst.msk [vmem:[%s2656_s24 + $0x60] sm:$0xff] %vm3858_vm6, %v1904_v24  ;;  %v1890_v53 = vpop.permute.xlu1 %1889 }
 0x3ff   : > { %v1907_v63 = vmul.f32 %v1890_v53, %v1811_v5  ;;  %v1885_v14 = vpop.permute.xlu0 %1884 }
 0x400   : > { %v1906_v41 = vmul.f32 %v1885_v14, %v1810_v46 }
 0x401   : > { %1923 = vst.msk [vmem:[%s2656_s24 + $0x78] sm:$0xff] %vm3859_vm5, %v1907_v63 }
 0x402   : > { %1922 = vst.msk [vmem:[%s2656_s24 + $0x70] sm:$0xff] %vm3860_vm1, %v1906_v41 }
 0x403 PF: > { %s20_s23 = sadd.s32 1, %s2532_s23   ;;  %s3861_s29 = sld [smem:[#allocation9_spill]] }
 0x404   : > { %p17_p5 = scmp.ge.s32.totalorder %s20_s23, 50   ;;  %s3862_s15 = sld [smem:[#allocation10_spill]] }
 0x405   : > { %s3863_s20 = smov %s2524_s22  ;;  %s3864_s21 = smov %s2528_s0 }
 0x406   :  { %19 = sbr.rel (!%p17_p5) target bundleno = 19 (0x13), region = 78 }
 0x409   : > { %s3865_s22 = smov %s3861_s29 }
 0x40a   : > { %s3866_s0 = smov %s3862_s15 }

</bundles_post_ra>
